<compile_context>
chip_gen: v6e
topology: v6e:2x2x1
jax: 0.10.0
libtpu: 0.0.40
codegen_flags: <defaults>
</compile_context>

<pallas_src>
import functools
import numpy as np
import jax
import jax.numpy as jnp
from jax.experimental import pallas as pl
from jax.experimental.pallas import tpu as pltpu

EPS = 1e-8        # GVP / vector-LayerNorm eps
LN_EPS = 1e-5     # nn.LayerNorm default eps

# Flip to jnp.bfloat16 on v6e/v7x to halve MXU operand traffic (accumulation
# stays f32 via preferred_element_type); re-check tolerances before enabling.
MATMUL_DTYPE = jnp.float32


def _round_up(x, m):
    return (x + m - 1) // m * m


def _padded_block_bytes(shape, itemsize=4):
    """f32 VMEM footprint of one block including (8,128) sublane/lane padding."""
    dims = list(shape)
    dims[-1] = _round_up(dims[-1], 128)
    if len(dims) >= 2:
        dims[-2] = _round_up(dims[-2], 8)
    n = 1
    for d in dims:
        n *= d
    return n * itemsize


# ----------------------------------------------------------------------------
# Fused GVPConvLayer kernel (one node tile of TN destination nodes per step)
# ----------------------------------------------------------------------------
def make_fused_layer_kernel(K, TN, ns, nv, out_w, eps, ln_eps):
    TE = K * TN   # edge rows handled by this tile (per xyz plane)
    md = MATMUL_DTYPE

    def mm(a, b):
        return jnp.dot(a.astype(md), b.astype(md),
                       preferred_element_type=jnp.float32)

    def gvp(s, v2d, w, scalar_act, vector_act, M):
        """Standard GVP. v2d: (3M, vi) xyz-row-stacked.
        w = (w_hv, wss, wsv, wsb) with w_hv = [wh | wh@wv] so vh and vo come
        from a single MXU push."""
        w_hv, wss, wsv, wsb = (r[...] for r in w)
        h = wsv.shape[0]
        hv = mm(v2d, w_hv)                                     # (3M, h+vo)
        vh3 = hv[:, :h].reshape(3, M, h)
        vn = jnp.sqrt(jnp.maximum(jnp.sum(vh3 * vh3, axis=0), eps))   # (M, h)
        so = mm(s, wss) + mm(vn, wsv) + wsb
        if scalar_act:
            so = jnp.maximum(so, 0.0)                          # relu
        vo = hv[:, h:]                                         # (3M, vo)
        if vector_act:
            vo3 = vo.reshape(3, M, -1)
            g = jax.nn.sigmoid(jnp.sqrt(jnp.maximum(
                jnp.sum(vo3 * vo3, axis=0), eps)))             # (M, vo)
            vo = (vo3 * g[None]).reshape(3 * M, -1)
        return so, vo

    def gvp_msg1(ms2d, mv2d, xs, xv2d, w):
        """First message GVP: src|edge part on TE rows, destination-node part
        computed once per node (TN rows) and broadcast-added over K slots."""
        w_hv_se, w_hv_dst, wss_se, wss_dst, wsv, wsb = (r[...] for r in w)
        h = wsv.shape[0]
        hv = mm(mv2d, w_hv_se)                                 # (3TE, h+vo)
        hv_d = mm(xv2d, w_hv_dst)                              # (3TN, h+vo)
        hv = (hv.reshape(3, K, TN, -1)
              + hv_d.reshape(3, 1, TN, -1)).reshape(3 * TE, -1)
        vh3 = hv[:, :h].reshape(3, TE, h)
        vn = jnp.sqrt(jnp.maximum(jnp.sum(vh3 * vh3, axis=0), eps))   # (TE, h)
        so = mm(ms2d, wss_se) + mm(vn, wsv) + wsb              # (TE, ns)
        so_d = mm(xs, wss_dst)                                 # (TN, ns)
        so = (so.reshape(K, TN, -1) + so_d[None]).reshape(TE, -1)
        so = jnp.maximum(so, 0.0)                              # relu
        vo3 = hv[:, h:].reshape(3, TE, -1)
        g = jax.nn.sigmoid(jnp.sqrt(jnp.maximum(
            jnp.sum(vo3 * vo3, axis=0), eps)))
        vo = (vo3 * g[None]).reshape(3 * TE, -1)
        return so, vo

    def add_layernorm(s, ds, v, dv, g_ref, b_ref):
        """Residual + gvp-pytorch LayerNorm. v/dv: (3, TN, nv) xyz-stacked."""
        s = s + ds
        v = v + dv
        vn = jnp.maximum(jnp.sum(v * v, axis=0), eps)          # (TN, nv)
        nz = (vn > 2.0 * eps).astype(jnp.float32)
        vm = (jnp.sum(vn * nz, axis=-1, keepdims=True)
              / (eps + jnp.sum(nz, axis=-1, keepdims=True)))   # (TN, 1)
        v = v * (nz * jax.lax.rsqrt(vm + eps))[None]
        mu = jnp.mean(s, axis=-1, keepdims=True)
        var = jnp.mean((s - mu) * (s - mu), axis=-1, keepdims=True)
        s = (s - mu) * jax.lax.rsqrt(var + ln_eps) * g_ref[...] + b_ref[...]
        return s, v

    def kernel(*refs):
        ms_ref, mv_ref, sc_ref, xs_ref, xv_ref = refs[:5]
        m1 = refs[5:11]
        m2 = refs[11:15]
        m3 = refs[15:19]
        f1 = refs[19:23]
        f2 = refs[23:27]
        ln0_g, ln0_b, ln1_g, ln1_b = refs[27:31]
        out_ref = refs[-1]

        # Message slab rows are already ordered (xyz plane, slot k, node): a
        # plain leading-dim reshape replaces the previous K-way concatenates.
        ms2d = ms_ref[...].reshape(TE, -1)          # (TE, ns+es)
        mv2d = mv_ref[...].reshape(3 * TE, -1)      # (3TE, nv+ev)
        xs = xs_ref[...]                            # (TN, ns)
        xv = xv_ref[...]                            # (3, TN, nv)
        xv2d = xv.reshape(3 * TN, nv)

        # --- message function: 3 GVPs (relu/sig, relu/sig, none/none) --------
        s_m, v_m = gvp_msg1(ms2d, mv2d, xs, xv2d, m1)
        s_m, v_m = gvp(s_m, v_m, m2, True, True, TE)
        s_m, v_m = gvp(s_m, v_m, m3, False, False, TE)   # (TE, ns), (3TE, nv)

        # --- mean aggregation over incoming slots (scale = valid/deg) --------
        sc = sc_ref[...]                            # (TN, K), lane-dense
        s_m3 = s_m.reshape(K, TN, ns)
        v_m4 = v_m.reshape(3, K, TN, nv)
        wk = sc[:, 0:1]                             # (TN, 1)
        dh_s = s_m3[0] * wk
        dh_v = v_m4[:, 0] * wk[None]
        for k in range(1, K):                       # static unroll (K small)
            wk = sc[:, k:k + 1]
            dh_s = dh_s + s_m3[k] * wk
            dh_v = dh_v + v_m4[:, k] * wk[None]

        # --- residual + LayerNorm #0 ------------------------------------------
        s, v = add_layernorm(xs, dh_s, xv, dh_v, ln0_g, ln0_b)

        # --- pointwise feedforward: 2 GVPs ------------------------------------
        fs, fv = gvp(s, v.reshape(3 * TN, nv), f1, True, True, TN)
        fs, fv = gvp(fs, fv, f2, False, False, TN)

        # --- residual + LayerNorm #1 ------------------------------------------
        s, v = add_layernorm(s, fs, v, fv.reshape(3, TN, nv), ln1_g, ln1_b)

        # --- lane-dense (128-wide) packed output [s | vx | vy | vz | 0-pad] ---
        pieces = [s, v[0], v[1], v[2]]
        pad_w = out_w - (ns + 3 * nv)
        if pad_w:
            pieces.append(jnp.zeros((TN, pad_w), jnp.float32))
        out_ref[...] = jnp.concatenate(pieces, axis=-1)

    return kernel


# ----------------------------------------------------------------------------
# Host-side graph preprocessing (numpy, done once per graph structure)
# ----------------------------------------------------------------------------
def build_graph_tables(edge_index, num_nodes):
    """Regroup the edge list into fixed-size per-destination incoming slots.

    Returns:
      src_tab: int32 [K, N]  source node of slot k of node n (0 if unused)
      perm:    int32 [K, N]  edge id of slot k of node n     (0 if unused)
      scale:   f32   [N, K]  valid(k,n) / in_degree(n)  (mean-aggr weight),
                             lane-dense layout for the kernel
    """
    ei = np.asarray(edge_index)
    src, dst = ei[0].astype(np.int64), ei[1].astype(np.int64)
    E = int(src.shape[0])
    deg = np.bincount(dst, minlength=num_nodes)
    K = max(int(deg.max()) if E > 0 else 1, 1)
    perm = np.zeros((K, num_nodes), dtype=np.int32)
    valid = np.zeros((K, num_nodes), dtype=np.float32)
    slot = np.zeros(num_nodes, dtype=np.int64)
    for e in range(E):
        n = dst[e]
        perm[slot[n], n] = e
        valid[slot[n], n] = 1.0
        slot[n] += 1
    scale = (valid / np.maximum(deg, 1)[None, :].astype(np.float32)).T   # (N, K)
    src_tab = src[perm].astype(np.int32)
    return (jnp.asarray(src_tab), jnp.asarray(perm),
            jnp.asarray(scale, dtype=jnp.float32))


# ----------------------------------------------------------------------------
# Weight packing: [wh | wh@wv] fusion + dst-split for the first message GVP
# ----------------------------------------------------------------------------
def pack_layer_weights(params, ns, nv, es, ev):
    def pack(p):
        wh, wss, wsv, wsb, wv = p
        return [jnp.concatenate([wh, wh @ wv], axis=1), wss, wsv, wsb]

    wh, wss, wsv, wsb, wv = params["m1"]
    wh_se, wh_dst = wh[:nv + ev], wh[nv + ev:]          # rows: [src|edge] vs dst
    wss_se, wss_dst = wss[:ns + es], wss[ns + es:]
    m1 = [jnp.concatenate([wh_se, wh_se @ wv], axis=1),
          jnp.concatenate([wh_dst, wh_dst @ wv], axis=1),
          wss_se, wss_dst, wsv, wsb]
    return (m1 + pack(params["m2"]) + pack(params["m3"])
            + pack(params["f1"]) + pack(params["f2"]))


# ----------------------------------------------------------------------------
# GVPConvLayer forward: XLA gathers feed one fused pallas_call
# ----------------------------------------------------------------------------
def gvp_conv_layer_forward(params, s, v, e_s, e_v, src_tab, perm, scale,
                           *, max_tile_nodes=128):
    """s: [N, ns]; v: [3, N, nv]; e_s: [E, es]; e_v: [3, E, ev];
    src_tab/perm: int32 [K, N]; scale: f32 [N, K]."""
    N, ns = s.shape
    nv = v.shape[-1]
    es = e_s.shape[-1]
    ev = e_v.shape[-1]
    K = src_tab.shape[0]
    OUT_W = _round_up(ns + 3 * nv, 128)

    # Node tile: multiple of 8 sublanes; >=2 grid steps whenever N > 8 so the
    # "parallel" axis can shard across v7x's two TensorCores.
    # (On v6e with modest K, raise max_tile_nodes to 256-512 for fewer steps.)
    TN = min(_round_up(max((N + 1) // 2, 1), 8), max_tile_nodes)
    Np = _round_up(N, TN)
    pad = Np - N

    s_p = jnp.pad(s, ((0, pad), (0, 0)))
    v_p = jnp.pad(v, ((0, 0), (0, pad), (0, 0)))
    src_p = jnp.pad(src_tab, ((0, 0), (0, pad)))
    perm_p = jnp.pad(perm, ((0, 0), (0, pad)))
    scale_p = jnp.pad(scale, ((0, pad), (0, 0)))                  # (Np, K)

    # ---- gathered message inputs (src + edge only; dst NOT duplicated) ------
    # TODO(synk): the src/edge feature gather stays in XLA; an in-kernel gather
    # from a VMEM-resident node table would need per-row dynamic loads.
    s_src = jnp.take(s_p, src_p, axis=0)                          # (K, Np, ns)
    es_g = jnp.take(e_s, perm_p, axis=0)                          # (K, Np, es)
    ms_in = jnp.concatenate([s_src, es_g], axis=-1)               # (K, Np, ns+es)

    v_src = jnp.take(v_p, src_p, axis=1)                          # (3, K, Np, nv)
    ev_g = jnp.take(e_v, perm_p, axis=1)                          # (3, K, Np, ev)
    mv_in = jnp.concatenate([v_src, ev_g], axis=-1)               # (3, K, Np, nv+ev)

    wlist = pack_layer_weights(params, ns, nv, es, ev)
    lns = list(params["ln0"]) + list(params["ln1"])

    row2 = lambda i: (i, 0)
    row3 = lambda i: (0, i, 0)
    row4 = lambda i: (0, 0, i, 0)
    const2 = lambda i: (0, 0)

    data_blocks = [(K, TN, ns + es), (3, K, TN, nv + ev), (TN, K),
                   (TN, ns), (3, TN, nv)]
    in_specs = ([pl.BlockSpec(data_blocks[0], row3),
                 pl.BlockSpec(data_blocks[1], row4),
                 pl.BlockSpec(data_blocks[2], row2),
                 pl.BlockSpec(data_blocks[3], row2),
                 pl.BlockSpec(data_blocks[4], row3)]
                + [pl.BlockSpec(tuple(w.shape), const2) for w in wlist + lns])

    # Explicit VMEM budget: double-buffered blocks with (8,128) padding + slack
    # for in-kernel temporaries (keep below physical VMEM on the target chip).
    block_shapes = (data_blocks + [tuple(w.shape) for w in wlist + lns]
                    + [(TN, OUT_W)])
    vmem_est = sum(_padded_block_bytes(bs) for bs in block_shapes)
    vmem_limit = int(min(max(4 * vmem_est + (16 << 20), 32 << 20), 96 << 20))

    out = pl.pallas_call(
        make_fused_layer_kernel(K, TN, ns, nv, OUT_W, EPS, LN_EPS),
        grid=(Np // TN,),
        in_specs=in_specs,
        out_specs=pl.BlockSpec((TN, OUT_W), row2),
        out_shape=jax.ShapeDtypeStruct((Np, OUT_W), jnp.float32),
        compiler_params=pltpu.CompilerParams(
            dimension_semantics=("parallel",),
            vmem_limit_bytes=vmem_limit),
    )(ms_in, mv_in, scale_p, s_p, v_p, *wlist, *lns)

    s_out = out[:N, :ns]
    v_out = jnp.transpose(out[:N, ns:ns + 3 * nv].reshape(N, 3, nv), (1, 0, 2))
    return (s_out, v_out), (e_s, e_v)


# ----------------------------------------------------------------------------
# Parameter construction (deterministic, shapes implied by __init__)
# ----------------------------------------------------------------------------
def init_gvp_params(key, in_dims, out_dims):
    si, vi = in_dims
    so, vo = out_dims
    h = max(vi, vo)
    k = jax.random.split(key, 5)
    wh = jax.random.normal(k[0], (vi, h), jnp.float32) / jnp.sqrt(vi)
    wss = jax.random.normal(k[1], (si, so), jnp.float32) / jnp.sqrt(si + h)
    wsv = jax.random.normal(k[2], (h, so), jnp.float32) / jnp.sqrt(si + h)
    wsb = jax.random.normal(k[3], (1, so), jnp.float32) * 0.1
    wv = jax.random.normal(k[4], (h, vo), jnp.float32) / jnp.sqrt(h)
    return (wh, wss, wsv, wsb, wv)


def init_layer_params(key, node_dims, edge_dims):
    ns, nv = node_dims
    es, ev = edge_dims
    ks = jax.random.split(key, 5)
    msg_in = (2 * ns + es, 2 * nv + ev)
    hid = (4 * ns, 2 * nv)
    return {
        "m1": init_gvp_params(ks[0], msg_in, node_dims),
        "m2": init_gvp_params(ks[1], node_dims, node_dims),
        "m3": init_gvp_params(ks[2], node_dims, node_dims),
        "f1": init_gvp_params(ks[3], node_dims, hid),
        "f2": init_gvp_params(ks[4], hid, node_dims),
        "ln0": (jnp.ones((1, ns), jnp.float32), jnp.zeros((1, ns), jnp.float32)),
        "ln1": (jnp.ones((1, ns), jnp.float32), jnp.zeros((1, ns), jnp.float32)),
    }


# ----------------------------------------------------------------------------
# Pure-JAX reference (unsplit weights, same math) used only for verification
# ----------------------------------------------------------------------------
def _gvp_ref(s, v, p, scalar_act, vector_act):
    wh, wss, wsv, wsb, wv = p
    vh = jnp.einsum("xmc,ch->xmh", v, wh)
    vn = jnp.sqrt(jnp.maximum(jnp.sum(vh * vh, axis=0), EPS))
    so = s @ wss + vn @ wsv + wsb
    if scalar_act:
        so = jax.nn.relu(so)
    vo = jnp.einsum("xmh,hv->xmv", vh, wv)
    if vector_act:
        g = jax.nn.sigmoid(jnp.sqrt(jnp.maximum(
            jnp.sum(vo * vo, axis=0, keepdims=True), EPS)))
        vo = vo * g
    return so, vo


def _ln_ref(s, ds, v, dv, gamma, beta):
    s = s + ds
    v = v + dv
    vn = jnp.maximum(jnp.sum(v * v, axis=0), EPS)
    mask = (vn > 2 * EPS).astype(jnp.float32)
    vn_mean = (jnp.sum(vn * mask, axis=-1, keepdims=True)
               / (EPS + jnp.sum(mask, axis=-1, keepdims=True)))
    v = v * (mask / jnp.sqrt(vn_mean + EPS))
    mu = jnp.mean(s, axis=-1, keepdims=True)
    var = jnp.mean((s - mu) ** 2, axis=-1, keepdims=True)
    s = (s - mu) / jnp.sqrt(var + LN_EPS) * gamma + beta
    return s, v


def _forward_ref(params, s, v, edge_index, e_s, e_v):
    src, dst = edge_index[0], edge_index[1]
    N = s.shape[0]
    ms = jnp.concatenate([s[src], e_s, s[dst]], axis=-1)
    mv = jnp.concatenate([v[:, src, :], e_v, v[:, dst, :]], axis=-1)
    ms, mv = _gvp_ref(ms, mv, params["m1"], True, True)
    ms, mv = _gvp_ref(ms, mv, params["m2"], True, True)
    ms, mv = _gvp_ref(ms, mv, params["m3"], False, False)
    a = jax.nn.one_hot(dst, N, dtype=jnp.float32).T
    a = a / jnp.clip(jnp.sum(a, axis=1, keepdims=True), 1.0)
    dhs = a @ ms
    dhv = jnp.einsum("ne,xec->xnc", a, mv)
    s, v = _ln_ref(s, dhs, v, dhv, *params["ln0"])
    fs, fv = _gvp_ref(s, v, params["f1"], True, True)
    fs, fv = _gvp_ref(fs, fv, params["f2"], False, False)
    s, v = _ln_ref(s, fs, v, fv, *params["ln1"])
    return (s, v), (e_s, e_v)


# ----------------------------------------------------------------------------
if __name__ == "__main__":
    node_dims = (32, 8)   # (n_scalar, n_vector)
    edge_dims = (16, 4)
    N = 8                 # nodes
    K = 3                 # incoming edges per node
    E = N * K

    key = jax.random.PRNGKey(0)
    kp, ks, kv, kes, kev = jax.random.split(key, 5)

    params = init_layer_params(kp, node_dims, edge_dims)

    # node features (torch convention [N, nv, 3] -> kernel layout [3, N, nv])
    s_nodes = jax.random.normal(ks, (N, node_dims[0]), jnp.float32)
    v_nodes_torch = jax.random.normal(kv, (N, node_dims[1], 3), jnp.float32)
    v_nodes = jnp.transpose(v_nodes_torch, (2, 0, 1))                     # [3, N, nv]

    # edges: node i receives from (i+1)%N, (i+2)%N, (i+3)%N
    dst = jnp.repeat(jnp.arange(N, dtype=jnp.int32), K)
    src = (dst + jnp.tile(jnp.arange(1, K + 1, dtype=jnp.int32), N)) % N
    edge_index = jnp.stack([src, dst])                                    # [2, E]

    e_s = jax.random.normal(kes, (E, edge_dims[0]), jnp.float32)
    e_v_torch = jax.random.normal(kev, (E, edge_dims[1], 3), jnp.float32)
    e_v = jnp.transpose(e_v_torch, (2, 0, 1))                             # [3, E, ev]

    # host-side graph tables (done once per graph structure)
    src_tab, perm, scale = build_graph_tables(np.asarray(edge_index), N)

    fwd = jax.jit(functools.partial(gvp_conv_layer_forward, params))
    (s_out, v_out), (es_out, ev_out) = fwd(s_nodes, v_nodes, e_s, e_v,
                                           src_tab, perm, scale)
    jax.block_until_ready((s_out, v_out))

    # verify against pure-JAX reference
    (s_ref, v_ref), _ = _forward_ref(params, s_nodes, v_nodes, edge_index, e_s, e_v)
    np.testing.assert_allclose(np.asarray(s_out), np.asarray(s_ref),
                               rtol=2e-3, atol=2e-3)
    np.testing.assert_allclose(np.asarray(v_out), np.asarray(v_ref),
                               rtol=2e-3, atol=2e-3)

    print("KERNEL_OK")
</pallas_src>

<mosaic_0001>
module attributes {stable_mosaic.version = 11 : i64} {
  func.func @kernel(%arg0: i32, %arg1: memref<3x8x48xf32, #tpu.memory_space<vmem>>, %arg2: memref<3x3x8x12xf32, #tpu.memory_space<vmem>>, %arg3: memref<8x3xf32, #tpu.memory_space<vmem>>, %arg4: memref<8x32xf32, #tpu.memory_space<vmem>>, %arg5: memref<3x8x8xf32, #tpu.memory_space<vmem>>, %arg6: memref<12x28xf32, #tpu.memory_space<vmem>>, %arg7: memref<8x28xf32, #tpu.memory_space<vmem>>, %arg8: memref<48x32xf32, #tpu.memory_space<vmem>>, %arg9: memref<32x32xf32, #tpu.memory_space<vmem>>, %arg10: memref<20x32xf32, #tpu.memory_space<vmem>>, %arg11: memref<1x32xf32, #tpu.memory_space<vmem>>, %arg12: memref<8x16xf32, #tpu.memory_space<vmem>>, %arg13: memref<32x32xf32, #tpu.memory_space<vmem>>, %arg14: memref<8x32xf32, #tpu.memory_space<vmem>>, %arg15: memref<1x32xf32, #tpu.memory_space<vmem>>, %arg16: memref<8x16xf32, #tpu.memory_space<vmem>>, %arg17: memref<32x32xf32, #tpu.memory_space<vmem>>, %arg18: memref<8x32xf32, #tpu.memory_space<vmem>>, %arg19: memref<1x32xf32, #tpu.memory_space<vmem>>, %arg20: memref<8x32xf32, #tpu.memory_space<vmem>>, %arg21: memref<32x128xf32, #tpu.memory_space<vmem>>, %arg22: memref<16x128xf32, #tpu.memory_space<vmem>>, %arg23: memref<1x128xf32, #tpu.memory_space<vmem>>, %arg24: memref<16x24xf32, #tpu.memory_space<vmem>>, %arg25: memref<128x32xf32, #tpu.memory_space<vmem>>, %arg26: memref<16x32xf32, #tpu.memory_space<vmem>>, %arg27: memref<1x32xf32, #tpu.memory_space<vmem>>, %arg28: memref<1x32xf32, #tpu.memory_space<vmem>>, %arg29: memref<1x32xf32, #tpu.memory_space<vmem>>, %arg30: memref<1x32xf32, #tpu.memory_space<vmem>>, %arg31: memref<1x32xf32, #tpu.memory_space<vmem>>, %arg32: memref<8x128xf32, #tpu.memory_space<vmem>>) attributes {dimension_semantics = [#tpu.dimension_semantics<parallel>], iteration_bounds = array<i64: 1>, scalar_prefetch = 0 : i64, scratch_operands = 0 : i64, tpu.core_type = #tpu.core_type<tc>, window_params = [{transform_indices = @transform_0, window_bounds = array<i64: 3, 8, 48>}, {transform_indices = @transform_1, window_bounds = array<i64: 3, 3, 8, 12>}, {transform_indices = @transform_2, window_bounds = array<i64: 8, 3>}, {transform_indices = @transform_3, window_bounds = array<i64: 8, 32>}, {transform_indices = @transform_4, window_bounds = array<i64: 3, 8, 8>}, {pipeline_mode = #tpu.pipeline_mode<synchronous>, transform_indices = @transform_5, window_bounds = array<i64: 12, 28>}, {pipeline_mode = #tpu.pipeline_mode<synchronous>, transform_indices = @transform_6, window_bounds = array<i64: 8, 28>}, {pipeline_mode = #tpu.pipeline_mode<synchronous>, transform_indices = @transform_7, window_bounds = array<i64: 48, 32>}, {pipeline_mode = #tpu.pipeline_mode<synchronous>, transform_indices = @transform_8, window_bounds = array<i64: 32, 32>}, {pipeline_mode = #tpu.pipeline_mode<synchronous>, transform_indices = @transform_9, window_bounds = array<i64: 20, 32>}, {pipeline_mode = #tpu.pipeline_mode<synchronous>, transform_indices = @transform_10, window_bounds = array<i64: 1, 32>}, {pipeline_mode = #tpu.pipeline_mode<synchronous>, transform_indices = @transform_11, window_bounds = array<i64: 8, 16>}, {pipeline_mode = #tpu.pipeline_mode<synchronous>, transform_indices = @transform_12, window_bounds = array<i64: 32, 32>}, {pipeline_mode = #tpu.pipeline_mode<synchronous>, transform_indices = @transform_13, window_bounds = array<i64: 8, 32>}, {pipeline_mode = #tpu.pipeline_mode<synchronous>, transform_indices = @transform_14, window_bounds = array<i64: 1, 32>}, {pipeline_mode = #tpu.pipeline_mode<synchronous>, transform_indices = @transform_15, window_bounds = array<i64: 8, 16>}, {pipeline_mode = #tpu.pipeline_mode<synchronous>, transform_indices = @transform_16, window_bounds = array<i64: 32, 32>}, {pipeline_mode = #tpu.pipeline_mode<synchronous>, transform_indices = @transform_17, window_bounds = array<i64: 8, 32>}, {pipeline_mode = #tpu.pipeline_mode<synchronous>, transform_indices = @transform_18, window_bounds = array<i64: 1, 32>}, {pipeline_mode = #tpu.pipeline_mode<synchronous>, transform_indices = @transform_19, window_bounds = array<i64: 8, 32>}, {pipeline_mode = #tpu.pipeline_mode<synchronous>, transform_indices = @transform_20, window_bounds = array<i64: 32, 128>}, {pipeline_mode = #tpu.pipeline_mode<synchronous>, transform_indices = @transform_21, window_bounds = array<i64: 16, 128>}, {pipeline_mode = #tpu.pipeline_mode<synchronous>, transform_indices = @transform_22, window_bounds = array<i64: 1, 128>}, {pipeline_mode = #tpu.pipeline_mode<synchronous>, transform_indices = @transform_23, window_bounds = array<i64: 16, 24>}, {pipeline_mode = #tpu.pipeline_mode<synchronous>, transform_indices = @transform_24, window_bounds = array<i64: 128, 32>}, {pipeline_mode = #tpu.pipeline_mode<synchronous>, transform_indices = @transform_25, window_bounds = array<i64: 16, 32>}, {pipeline_mode = #tpu.pipeline_mode<synchronous>, transform_indices = @transform_26, window_bounds = array<i64: 1, 32>}, {pipeline_mode = #tpu.pipeline_mode<synchronous>, transform_indices = @transform_27, window_bounds = array<i64: 1, 32>}, {pipeline_mode = #tpu.pipeline_mode<synchronous>, transform_indices = @transform_28, window_bounds = array<i64: 1, 32>}, {pipeline_mode = #tpu.pipeline_mode<synchronous>, transform_indices = @transform_29, window_bounds = array<i64: 1, 32>}, {pipeline_mode = #tpu.pipeline_mode<synchronous>, transform_indices = @transform_30, window_bounds = array<i64: 1, 32>}, {transform_indices = @transform_31, window_bounds = array<i64: 8, 128>}]} {
    %c0 = arith.constant 0 : index
    %c0_0 = arith.constant 0 : index
    %c0_1 = arith.constant 0 : index
    %0 = vector.load %arg1[%c0, %c0_0, %c0_1] : memref<3x8x48xf32, #tpu.memory_space<vmem>>, vector<3x8x48xf32>
    %1 = vector.shape_cast %0 : vector<3x8x48xf32> to vector<24x48xf32>
    %c0_2 = arith.constant 0 : index
    %c0_3 = arith.constant 0 : index
    %c0_4 = arith.constant 0 : index
    %c0_5 = arith.constant 0 : index
    %2 = vector.load %arg2[%c0_2, %c0_3, %c0_4, %c0_5] : memref<3x3x8x12xf32, #tpu.memory_space<vmem>>, vector<3x3x8x12xf32>
    %3 = vector.shape_cast %2 : vector<3x3x8x12xf32> to vector<72x12xf32>
    %c0_6 = arith.constant 0 : index
    %c0_7 = arith.constant 0 : index
    %4 = vector.load %arg4[%c0_6, %c0_7] : memref<8x32xf32, #tpu.memory_space<vmem>>, vector<8x32xf32>
    %c0_8 = arith.constant 0 : index
    %c0_9 = arith.constant 0 : index
    %c0_10 = arith.constant 0 : index
    %5 = vector.load %arg5[%c0_8, %c0_9, %c0_10] : memref<3x8x8xf32, #tpu.memory_space<vmem>>, vector<3x8x8xf32>
    %6 = vector.shape_cast %5 : vector<3x8x8xf32> to vector<24x8xf32>
    %c0_11 = arith.constant 0 : index
    %c0_12 = arith.constant 0 : index
    %7 = vector.load %arg6[%c0_11, %c0_12] : memref<12x28xf32, #tpu.memory_space<vmem>>, vector<12x28xf32>
    %c0_13 = arith.constant 0 : index
    %c0_14 = arith.constant 0 : index
    %8 = vector.load %arg7[%c0_13, %c0_14] : memref<8x28xf32, #tpu.memory_space<vmem>>, vector<8x28xf32>
    %c0_15 = arith.constant 0 : index
    %c0_16 = arith.constant 0 : index
    %9 = vector.load %arg8[%c0_15, %c0_16] : memref<48x32xf32, #tpu.memory_space<vmem>>, vector<48x32xf32>
    %c0_17 = arith.constant 0 : index
    %c0_18 = arith.constant 0 : index
    %10 = vector.load %arg9[%c0_17, %c0_18] : memref<32x32xf32, #tpu.memory_space<vmem>>, vector<32x32xf32>
    %c0_19 = arith.constant 0 : index
    %c0_20 = arith.constant 0 : index
    %11 = vector.load %arg10[%c0_19, %c0_20] : memref<20x32xf32, #tpu.memory_space<vmem>>, vector<20x32xf32>
    %c0_21 = arith.constant 0 : index
    %c0_22 = arith.constant 0 : index
    %12 = vector.load %arg11[%c0_21, %c0_22] : memref<1x32xf32, #tpu.memory_space<vmem>>, vector<1x32xf32>
    %cst = arith.constant dense<0.000000e+00> : vector<72x28xf32>
    %13 = tpu.matmul %3, %7, %cst {dimension_numbers = #tpu.dot_dimension_numbers<[1], [0], [0], [1], [0, 0, 1, 1], [], []>} : vector<72x12xf32>, vector<12x28xf32>, vector<72x28xf32> -> vector<72x28xf32>
    %cst_23 = arith.constant dense<0.000000e+00> : vector<24x28xf32>
    %14 = tpu.matmul %6, %8, %cst_23 {dimension_numbers = #tpu.dot_dimension_numbers<[1], [0], [0], [1], [0, 0, 1, 1], [], []>} : vector<24x8xf32>, vector<8x28xf32>, vector<24x28xf32> -> vector<24x28xf32>
    %15 = vector.shape_cast %13 : vector<72x28xf32> to vector<3x3x8x28xf32>
    %16 = vector.shape_cast %14 : vector<24x28xf32> to vector<3x1x8x28xf32>
    %17 = vector.broadcast %16 : vector<3x1x8x28xf32> to vector<3x3x8x28xf32>
    %18 = arith.addf %15, %17 : vector<3x3x8x28xf32>
    %19 = vector.shape_cast %18 : vector<3x3x8x28xf32> to vector<72x28xf32>
    %20 = vector.extract_strided_slice %19 {offsets = [0, 0], sizes = [72, 20], strides = [1, 1]} : vector<72x28xf32> to vector<72x20xf32>
    %21 = vector.shape_cast %20 : vector<72x20xf32> to vector<3x24x20xf32>
    %22 = arith.mulf %21, %21 : vector<3x24x20xf32>
    %cst_24 = arith.constant dense<0.000000e+00> : vector<24x20xf32>
    %23 = vector.multi_reduction <add>, %22, %cst_24 [0] : vector<3x24x20xf32> to vector<24x20xf32>
    %cst_25 = arith.constant 9.99999993E-9 : f32
    %24 = vector.broadcast %cst_25 : f32 to vector<24x20xf32>
    %25 = arith.maximumf %23, %24 : vector<24x20xf32>
    %26 = math.sqrt %25 : vector<24x20xf32>
    %cst_26 = arith.constant dense<0.000000e+00> : vector<24x32xf32>
    %27 = tpu.matmul %1, %9, %cst_26 {dimension_numbers = #tpu.dot_dimension_numbers<[1], [0], [0], [1], [0, 0, 1, 1], [], []>} : vector<24x48xf32>, vector<48x32xf32>, vector<24x32xf32> -> vector<24x32xf32>
    %cst_27 = arith.constant dense<0.000000e+00> : vector<24x32xf32>
    %28 = tpu.matmul %26, %11, %cst_27 {dimension_numbers = #tpu.dot_dimension_numbers<[1], [0], [0], [1], [0, 0, 1, 1], [], []>} : vector<24x20xf32>, vector<20x32xf32>, vector<24x32xf32> -> vector<24x32xf32>
    %29 = arith.addf %27, %28 : vector<24x32xf32>
    %30 = vector.broadcast %12 : vector<1x32xf32> to vector<24x32xf32>
    %31 = arith.addf %29, %30 : vector<24x32xf32>
    %cst_28 = arith.constant dense<0.000000e+00> : vector<8x32xf32>
    %32 = tpu.matmul %4, %10, %cst_28 {dimension_numbers = #tpu.dot_dimension_numbers<[1], [0], [0], [1], [0, 0, 1, 1], [], []>} : vector<8x32xf32>, vector<32x32xf32>, vector<8x32xf32> -> vector<8x32xf32>
    %33 = vector.shape_cast %31 : vector<24x32xf32> to vector<3x8x32xf32>
    %34 = vector.shape_cast %32 : vector<8x32xf32> to vector<1x8x32xf32>
    %35 = vector.broadcast %34 : vector<1x8x32xf32> to vector<3x8x32xf32>
    %36 = arith.addf %33, %35 : vector<3x8x32xf32>
    %37 = vector.shape_cast %36 : vector<3x8x32xf32> to vector<24x32xf32>
    %cst_29 = arith.constant 0.000000e+00 : f32
    %38 = vector.broadcast %cst_29 : f32 to vector<24x32xf32>
    %39 = arith.maximumf %37, %38 : vector<24x32xf32>
    %40 = vector.extract_strided_slice %19 {offsets = [0, 20], sizes = [72, 8], strides = [1, 1]} : vector<72x28xf32> to vector<72x8xf32>
    %41 = vector.shape_cast %40 : vector<72x8xf32> to vector<3x24x8xf32>
    %42 = arith.mulf %41, %41 : vector<3x24x8xf32>
    %cst_30 = arith.constant dense<0.000000e+00> : vector<24x8xf32>
    %43 = vector.multi_reduction <add>, %42, %cst_30 [0] : vector<3x24x8xf32> to vector<24x8xf32>
    %cst_31 = arith.constant 9.99999993E-9 : f32
    %44 = vector.broadcast %cst_31 : f32 to vector<24x8xf32>
    %45 = arith.maximumf %43, %44 : vector<24x8xf32>
    %46 = math.sqrt %45 : vector<24x8xf32>
    %47 = arith.negf %46 : vector<24x8xf32>
    %48 = math.exp %47 : vector<24x8xf32>
    %cst_32 = arith.constant 1.000000e+00 : f32
    %49 = vector.broadcast %cst_32 : f32 to vector<24x8xf32>
    %50 = arith.addf %49, %48 : vector<24x8xf32>
    %51 = arith.divf %49, %50 : vector<24x8xf32>
    %52 = vector.shape_cast %51 : vector<24x8xf32> to vector<1x24x8xf32>
    %53 = vector.broadcast %52 : vector<1x24x8xf32> to vector<3x24x8xf32>
    %54 = arith.mulf %41, %53 : vector<3x24x8xf32>
    %55 = vector.shape_cast %54 : vector<3x24x8xf32> to vector<72x8xf32>
    %c0_33 = arith.constant 0 : index
    %c0_34 = arith.constant 0 : index
    %56 = vector.load %arg12[%c0_33, %c0_34] : memref<8x16xf32, #tpu.memory_space<vmem>>, vector<8x16xf32>
    %c0_35 = arith.constant 0 : index
    %c0_36 = arith.constant 0 : index
    %57 = vector.load %arg13[%c0_35, %c0_36] : memref<32x32xf32, #tpu.memory_space<vmem>>, vector<32x32xf32>
    %c0_37 = arith.constant 0 : index
    %c0_38 = arith.constant 0 : index
    %58 = vector.load %arg14[%c0_37, %c0_38] : memref<8x32xf32, #tpu.memory_space<vmem>>, vector<8x32xf32>
    %c0_39 = arith.constant 0 : index
    %c0_40 = arith.constant 0 : index
    %59 = vector.load %arg15[%c0_39, %c0_40] : memref<1x32xf32, #tpu.memory_space<vmem>>, vector<1x32xf32>
    %cst_41 = arith.constant dense<0.000000e+00> : vector<72x16xf32>
    %60 = tpu.matmul %55, %56, %cst_41 {dimension_numbers = #tpu.dot_dimension_numbers<[1], [0], [0], [1], [0, 0, 1, 1], [], []>} : vector<72x8xf32>, vector<8x16xf32>, vector<72x16xf32> -> vector<72x16xf32>
    %61 = vector.extract_strided_slice %60 {offsets = [0, 0], sizes = [72, 8], strides = [1, 1]} : vector<72x16xf32> to vector<72x8xf32>
    %62 = vector.shape_cast %61 : vector<72x8xf32> to vector<3x24x8xf32>
    %63 = arith.mulf %62, %62 : vector<3x24x8xf32>
    %cst_42 = arith.constant dense<0.000000e+00> : vector<24x8xf32>
    %64 = vector.multi_reduction <add>, %63, %cst_42 [0] : vector<3x24x8xf32> to vector<24x8xf32>
    %cst_43 = arith.constant 9.99999993E-9 : f32
    %65 = vector.broadcast %cst_43 : f32 to vector<24x8xf32>
    %66 = arith.maximumf %64, %65 : vector<24x8xf32>
    %67 = math.sqrt %66 : vector<24x8xf32>
    %cst_44 = arith.constant dense<0.000000e+00> : vector<24x32xf32>
    %68 = tpu.matmul %39, %57, %cst_44 {dimension_numbers = #tpu.dot_dimension_numbers<[1], [0], [0], [1], [0, 0, 1, 1], [], []>} : vector<24x32xf32>, vector<32x32xf32>, vector<24x32xf32> -> vector<24x32xf32>
    %cst_45 = arith.constant dense<0.000000e+00> : vector<24x32xf32>
    %69 = tpu.matmul %67, %58, %cst_45 {dimension_numbers = #tpu.dot_dimension_numbers<[1], [0], [0], [1], [0, 0, 1, 1], [], []>} : vector<24x8xf32>, vector<8x32xf32>, vector<24x32xf32> -> vector<24x32xf32>
    %70 = arith.addf %68, %69 : vector<24x32xf32>
    %71 = vector.broadcast %59 : vector<1x32xf32> to vector<24x32xf32>
    %72 = arith.addf %70, %71 : vector<24x32xf32>
    %cst_46 = arith.constant 0.000000e+00 : f32
    %73 = vector.broadcast %cst_46 : f32 to vector<24x32xf32>
    %74 = arith.maximumf %72, %73 : vector<24x32xf32>
    %75 = vector.extract_strided_slice %60 {offsets = [0, 8], sizes = [72, 8], strides = [1, 1]} : vector<72x16xf32> to vector<72x8xf32>
    %76 = vector.shape_cast %75 : vector<72x8xf32> to vector<3x24x8xf32>
    %77 = arith.mulf %76, %76 : vector<3x24x8xf32>
    %cst_47 = arith.constant dense<0.000000e+00> : vector<24x8xf32>
    %78 = vector.multi_reduction <add>, %77, %cst_47 [0] : vector<3x24x8xf32> to vector<24x8xf32>
    %cst_48 = arith.constant 9.99999993E-9 : f32
    %79 = vector.broadcast %cst_48 : f32 to vector<24x8xf32>
    %80 = arith.maximumf %78, %79 : vector<24x8xf32>
    %81 = math.sqrt %80 : vector<24x8xf32>
    %82 = arith.negf %81 : vector<24x8xf32>
    %83 = math.exp %82 : vector<24x8xf32>
    %cst_49 = arith.constant 1.000000e+00 : f32
    %84 = vector.broadcast %cst_49 : f32 to vector<24x8xf32>
    %85 = arith.addf %84, %83 : vector<24x8xf32>
    %86 = arith.divf %84, %85 : vector<24x8xf32>
    %87 = vector.shape_cast %86 : vector<24x8xf32> to vector<1x24x8xf32>
    %88 = vector.broadcast %87 : vector<1x24x8xf32> to vector<3x24x8xf32>
    %89 = arith.mulf %76, %88 : vector<3x24x8xf32>
    %90 = vector.shape_cast %89 : vector<3x24x8xf32> to vector<72x8xf32>
    %c0_50 = arith.constant 0 : index
    %c0_51 = arith.constant 0 : index
    %91 = vector.load %arg16[%c0_50, %c0_51] : memref<8x16xf32, #tpu.memory_space<vmem>>, vector<8x16xf32>
    %c0_52 = arith.constant 0 : index
    %c0_53 = arith.constant 0 : index
    %92 = vector.load %arg17[%c0_52, %c0_53] : memref<32x32xf32, #tpu.memory_space<vmem>>, vector<32x32xf32>
    %c0_54 = arith.constant 0 : index
    %c0_55 = arith.constant 0 : index
    %93 = vector.load %arg18[%c0_54, %c0_55] : memref<8x32xf32, #tpu.memory_space<vmem>>, vector<8x32xf32>
    %c0_56 = arith.constant 0 : index
    %c0_57 = arith.constant 0 : index
    %94 = vector.load %arg19[%c0_56, %c0_57] : memref<1x32xf32, #tpu.memory_space<vmem>>, vector<1x32xf32>
    %cst_58 = arith.constant dense<0.000000e+00> : vector<72x16xf32>
    %95 = tpu.matmul %90, %91, %cst_58 {dimension_numbers = #tpu.dot_dimension_numbers<[1], [0], [0], [1], [0, 0, 1, 1], [], []>} : vector<72x8xf32>, vector<8x16xf32>, vector<72x16xf32> -> vector<72x16xf32>
    %96 = vector.extract_strided_slice %95 {offsets = [0, 0], sizes = [72, 8], strides = [1, 1]} : vector<72x16xf32> to vector<72x8xf32>
    %97 = vector.shape_cast %96 : vector<72x8xf32> to vector<3x24x8xf32>
    %98 = arith.mulf %97, %97 : vector<3x24x8xf32>
    %cst_59 = arith.constant dense<0.000000e+00> : vector<24x8xf32>
    %99 = vector.multi_reduction <add>, %98, %cst_59 [0] : vector<3x24x8xf32> to vector<24x8xf32>
    %cst_60 = arith.constant 9.99999993E-9 : f32
    %100 = vector.broadcast %cst_60 : f32 to vector<24x8xf32>
    %101 = arith.maximumf %99, %100 : vector<24x8xf32>
    %102 = math.sqrt %101 : vector<24x8xf32>
    %cst_61 = arith.constant dense<0.000000e+00> : vector<24x32xf32>
    %103 = tpu.matmul %74, %92, %cst_61 {dimension_numbers = #tpu.dot_dimension_numbers<[1], [0], [0], [1], [0, 0, 1, 1], [], []>} : vector<24x32xf32>, vector<32x32xf32>, vector<24x32xf32> -> vector<24x32xf32>
    %cst_62 = arith.constant dense<0.000000e+00> : vector<24x32xf32>
    %104 = tpu.matmul %102, %93, %cst_62 {dimension_numbers = #tpu.dot_dimension_numbers<[1], [0], [0], [1], [0, 0, 1, 1], [], []>} : vector<24x8xf32>, vector<8x32xf32>, vector<24x32xf32> -> vector<24x32xf32>
    %105 = arith.addf %103, %104 : vector<24x32xf32>
    %106 = vector.broadcast %94 : vector<1x32xf32> to vector<24x32xf32>
    %107 = arith.addf %105, %106 : vector<24x32xf32>
    %108 = vector.extract_strided_slice %95 {offsets = [0, 8], sizes = [72, 8], strides = [1, 1]} : vector<72x16xf32> to vector<72x8xf32>
    %c0_63 = arith.constant 0 : index
    %c0_64 = arith.constant 0 : index
    %109 = vector.load %arg3[%c0_63, %c0_64] : memref<8x3xf32, #tpu.memory_space<vmem>>, vector<8x3xf32>
    %110 = vector.shape_cast %107 : vector<24x32xf32> to vector<3x8x32xf32>
    %111 = vector.shape_cast %108 : vector<72x8xf32> to vector<3x3x8x8xf32>
    %112 = vector.extract_strided_slice %109 {offsets = [0, 0], sizes = [8, 1], strides = [1, 1]} : vector<8x3xf32> to vector<8x1xf32>
    %113 = vector.extract_strided_slice %110 {offsets = [0, 0, 0], sizes = [1, 8, 32], strides = [1, 1, 1]} : vector<3x8x32xf32> to vector<1x8x32xf32>
    %114 = vector.shape_cast %113 : vector<1x8x32xf32> to vector<8x32xf32>
    %115 = vector.broadcast %112 : vector<8x1xf32> to vector<8x32xf32>
    %116 = arith.mulf %114, %115 : vector<8x32xf32>
    %117 = vector.extract_strided_slice %111 {offsets = [0, 0, 0, 0], sizes = [3, 1, 8, 8], strides = [1, 1, 1, 1]} : vector<3x3x8x8xf32> to vector<3x1x8x8xf32>
    %118 = vector.shape_cast %117 : vector<3x1x8x8xf32> to vector<3x8x8xf32>
    %119 = vector.shape_cast %112 : vector<8x1xf32> to vector<1x8x1xf32>
    %120 = vector.broadcast %119 : vector<1x8x1xf32> to vector<3x8x8xf32>
    %121 = arith.mulf %118, %120 : vector<3x8x8xf32>
    %122 = vector.extract_strided_slice %109 {offsets = [0, 1], sizes = [8, 1], strides = [1, 1]} : vector<8x3xf32> to vector<8x1xf32>
    %123 = vector.extract_strided_slice %110 {offsets = [1, 0, 0], sizes = [1, 8, 32], strides = [1, 1, 1]} : vector<3x8x32xf32> to vector<1x8x32xf32>
    %124 = vector.shape_cast %123 : vector<1x8x32xf32> to vector<8x32xf32>
    %125 = vector.broadcast %122 : vector<8x1xf32> to vector<8x32xf32>
    %126 = arith.mulf %124, %125 : vector<8x32xf32>
    %127 = arith.addf %116, %126 : vector<8x32xf32>
    %128 = vector.extract_strided_slice %111 {offsets = [0, 1, 0, 0], sizes = [3, 1, 8, 8], strides = [1, 1, 1, 1]} : vector<3x3x8x8xf32> to vector<3x1x8x8xf32>
    %129 = vector.shape_cast %128 : vector<3x1x8x8xf32> to vector<3x8x8xf32>
    %130 = vector.shape_cast %122 : vector<8x1xf32> to vector<1x8x1xf32>
    %131 = vector.broadcast %130 : vector<1x8x1xf32> to vector<3x8x8xf32>
    %132 = arith.mulf %129, %131 : vector<3x8x8xf32>
    %133 = arith.addf %121, %132 : vector<3x8x8xf32>
    %134 = vector.extract_strided_slice %109 {offsets = [0, 2], sizes = [8, 1], strides = [1, 1]} : vector<8x3xf32> to vector<8x1xf32>
    %135 = vector.extract_strided_slice %110 {offsets = [2, 0, 0], sizes = [1, 8, 32], strides = [1, 1, 1]} : vector<3x8x32xf32> to vector<1x8x32xf32>
    %136 = vector.shape_cast %135 : vector<1x8x32xf32> to vector<8x32xf32>
    %137 = vector.broadcast %134 : vector<8x1xf32> to vector<8x32xf32>
    %138 = arith.mulf %136, %137 : vector<8x32xf32>
    %139 = arith.addf %127, %138 : vector<8x32xf32>
    %140 = vector.extract_strided_slice %111 {offsets = [0, 2, 0, 0], sizes = [3, 1, 8, 8], strides = [1, 1, 1, 1]} : vector<3x3x8x8xf32> to vector<3x1x8x8xf32>
    %141 = vector.shape_cast %140 : vector<3x1x8x8xf32> to vector<3x8x8xf32>
    %142 = vector.shape_cast %134 : vector<8x1xf32> to vector<1x8x1xf32>
    %143 = vector.broadcast %142 : vector<1x8x1xf32> to vector<3x8x8xf32>
    %144 = arith.mulf %141, %143 : vector<3x8x8xf32>
    %145 = arith.addf %133, %144 : vector<3x8x8xf32>
    %146 = arith.addf %4, %139 : vector<8x32xf32>
    %147 = arith.addf %5, %145 : vector<3x8x8xf32>
    %148 = arith.mulf %147, %147 : vector<3x8x8xf32>
    %cst_65 = arith.constant dense<0.000000e+00> : vector<8x8xf32>
    %149 = vector.multi_reduction <add>, %148, %cst_65 [0] : vector<3x8x8xf32> to vector<8x8xf32>
    %cst_66 = arith.constant 9.99999993E-9 : f32
    %150 = vector.broadcast %cst_66 : f32 to vector<8x8xf32>
    %151 = arith.maximumf %149, %150 : vector<8x8xf32>
    %cst_67 = arith.constant 2.000000e-08 : f32
    %152 = vector.broadcast %cst_67 : f32 to vector<8x8xf32>
    %153 = arith.cmpf ogt, %151, %152 : vector<8x8xf32>
    %154 = arith.extui %153 : vector<8x8xi1> to vector<8x8xi32>
    %155 = arith.sitofp %154 : vector<8x8xi32> to vector<8x8xf32>
    %156 = arith.mulf %151, %155 : vector<8x8xf32>
    %cst_68 = arith.constant dense<0.000000e+00> : vector<8xf32>
    %157 = vector.multi_reduction <add>, %156, %cst_68 [1] : vector<8x8xf32> to vector<8xf32>
    %158 = vector.shape_cast %157 : vector<8xf32> to vector<8x1xf32>
    %cst_69 = arith.constant dense<0.000000e+00> : vector<8xf32>
    %159 = vector.multi_reduction <add>, %155, %cst_69 [1] : vector<8x8xf32> to vector<8xf32>
    %160 = vector.shape_cast %159 : vector<8xf32> to vector<8x1xf32>
    %cst_70 = arith.constant 9.99999993E-9 : f32
    %161 = vector.broadcast %cst_70 : f32 to vector<8x1xf32>
    %162 = arith.addf %161, %160 : vector<8x1xf32>
    %163 = arith.divf %158, %162 : vector<8x1xf32>
    %cst_71 = arith.constant 9.99999993E-9 : f32
    %164 = vector.broadcast %cst_71 : f32 to vector<8x1xf32>
    %165 = arith.addf %163, %164 : vector<8x1xf32>
    %166 = math.rsqrt %165 : vector<8x1xf32>
    %167 = vector.broadcast %166 : vector<8x1xf32> to vector<8x8xf32>
    %168 = arith.mulf %155, %167 : vector<8x8xf32>
    %169 = vector.shape_cast %168 : vector<8x8xf32> to vector<1x8x8xf32>
    %170 = vector.broadcast %169 : vector<1x8x8xf32> to vector<3x8x8xf32>
    %171 = arith.mulf %147, %170 : vector<3x8x8xf32>
    %cst_72 = arith.constant dense<0.000000e+00> : vector<8xf32>
    %172 = vector.multi_reduction <add>, %146, %cst_72 [1] : vector<8x32xf32> to vector<8xf32>
    %173 = vector.shape_cast %172 : vector<8xf32> to vector<8x1xf32>
    %cst_73 = arith.constant 3.200000e+01 : f32
    %174 = vector.broadcast %cst_73 : f32 to vector<8x1xf32>
    %175 = arith.divf %173, %174 : vector<8x1xf32>
    %176 = vector.broadcast %175 : vector<8x1xf32> to vector<8x32xf32>
    %177 = arith.subf %146, %176 : vector<8x32xf32>
    %178 = vector.broadcast %175 : vector<8x1xf32> to vector<8x32xf32>
    %179 = arith.subf %146, %178 : vector<8x32xf32>
    %180 = arith.mulf %177, %179 : vector<8x32xf32>
    %cst_74 = arith.constant dense<0.000000e+00> : vector<8xf32>
    %181 = vector.multi_reduction <add>, %180, %cst_74 [1] : vector<8x32xf32> to vector<8xf32>
    %182 = vector.shape_cast %181 : vector<8xf32> to vector<8x1xf32>
    %cst_75 = arith.constant 3.200000e+01 : f32
    %183 = vector.broadcast %cst_75 : f32 to vector<8x1xf32>
    %184 = arith.divf %182, %183 : vector<8x1xf32>
    %185 = vector.broadcast %175 : vector<8x1xf32> to vector<8x32xf32>
    %186 = arith.subf %146, %185 : vector<8x32xf32>
    %cst_76 = arith.constant 9.99999974E-6 : f32
    %187 = vector.broadcast %cst_76 : f32 to vector<8x1xf32>
    %188 = arith.addf %184, %187 : vector<8x1xf32>
    %189 = math.rsqrt %188 : vector<8x1xf32>
    %190 = vector.broadcast %189 : vector<8x1xf32> to vector<8x32xf32>
    %191 = arith.mulf %186, %190 : vector<8x32xf32>
    %c0_77 = arith.constant 0 : index
    %c0_78 = arith.constant 0 : index
    %192 = vector.load %arg28[%c0_77, %c0_78] : memref<1x32xf32, #tpu.memory_space<vmem>>, vector<1x32xf32>
    %193 = vector.broadcast %192 : vector<1x32xf32> to vector<8x32xf32>
    %194 = arith.mulf %191, %193 : vector<8x32xf32>
    %c0_79 = arith.constant 0 : index
    %c0_80 = arith.constant 0 : index
    %195 = vector.load %arg29[%c0_79, %c0_80] : memref<1x32xf32, #tpu.memory_space<vmem>>, vector<1x32xf32>
    %196 = vector.broadcast %195 : vector<1x32xf32> to vector<8x32xf32>
    %197 = arith.addf %194, %196 : vector<8x32xf32>
    %198 = vector.shape_cast %171 : vector<3x8x8xf32> to vector<24x8xf32>
    %c0_81 = arith.constant 0 : index
    %c0_82 = arith.constant 0 : index
    %199 = vector.load %arg20[%c0_81, %c0_82] : memref<8x32xf32, #tpu.memory_space<vmem>>, vector<8x32xf32>
    %c0_83 = arith.constant 0 : index
    %c0_84 = arith.constant 0 : index
    %200 = vector.load %arg21[%c0_83, %c0_84] : memref<32x128xf32, #tpu.memory_space<vmem>>, vector<32x128xf32>
    %c0_85 = arith.constant 0 : index
    %c0_86 = arith.constant 0 : index
    %201 = vector.load %arg22[%c0_85, %c0_86] : memref<16x128xf32, #tpu.memory_space<vmem>>, vector<16x128xf32>
    %c0_87 = arith.constant 0 : index
    %c0_88 = arith.constant 0 : index
    %202 = vector.load %arg23[%c0_87, %c0_88] : memref<1x128xf32, #tpu.memory_space<vmem>>, vector<1x128xf32>
    %cst_89 = arith.constant dense<0.000000e+00> : vector<24x32xf32>
    %203 = tpu.matmul %198, %199, %cst_89 {dimension_numbers = #tpu.dot_dimension_numbers<[1], [0], [0], [1], [0, 0, 1, 1], [], []>} : vector<24x8xf32>, vector<8x32xf32>, vector<24x32xf32> -> vector<24x32xf32>
    %204 = vector.extract_strided_slice %203 {offsets = [0, 0], sizes = [24, 16], strides = [1, 1]} : vector<24x32xf32> to vector<24x16xf32>
    %205 = vector.shape_cast %204 : vector<24x16xf32> to vector<3x8x16xf32>
    %206 = arith.mulf %205, %205 : vector<3x8x16xf32>
    %cst_90 = arith.constant dense<0.000000e+00> : vector<8x16xf32>
    %207 = vector.multi_reduction <add>, %206, %cst_90 [0] : vector<3x8x16xf32> to vector<8x16xf32>
    %cst_91 = arith.constant 9.99999993E-9 : f32
    %208 = vector.broadcast %cst_91 : f32 to vector<8x16xf32>
    %209 = arith.maximumf %207, %208 : vector<8x16xf32>
    %210 = math.sqrt %209 : vector<8x16xf32>
    %cst_92 = arith.constant dense<0.000000e+00> : vector<8x128xf32>
    %211 = tpu.matmul %197, %200, %cst_92 {dimension_numbers = #tpu.dot_dimension_numbers<[1], [0], [0], [1], [0, 0, 1, 1], [], []>} : vector<8x32xf32>, vector<32x128xf32>, vector<8x128xf32> -> vector<8x128xf32>
    %cst_93 = arith.constant dense<0.000000e+00> : vector<8x128xf32>
    %212 = tpu.matmul %210, %201, %cst_93 {dimension_numbers = #tpu.dot_dimension_numbers<[1], [0], [0], [1], [0, 0, 1, 1], [], []>} : vector<8x16xf32>, vector<16x128xf32>, vector<8x128xf32> -> vector<8x128xf32>
    %213 = arith.addf %211, %212 : vector<8x128xf32>
    %214 = vector.broadcast %202 : vector<1x128xf32> to vector<8x128xf32>
    %215 = arith.addf %213, %214 : vector<8x128xf32>
    %cst_94 = arith.constant 0.000000e+00 : f32
    %216 = vector.broadcast %cst_94 : f32 to vector<8x128xf32>
    %217 = arith.maximumf %215, %216 : vector<8x128xf32>
    %218 = vector.extract_strided_slice %203 {offsets = [0, 16], sizes = [24, 16], strides = [1, 1]} : vector<24x32xf32> to vector<24x16xf32>
    %219 = vector.shape_cast %218 : vector<24x16xf32> to vector<3x8x16xf32>
    %220 = arith.mulf %219, %219 : vector<3x8x16xf32>
    %cst_95 = arith.constant dense<0.000000e+00> : vector<8x16xf32>
    %221 = vector.multi_reduction <add>, %220, %cst_95 [0] : vector<3x8x16xf32> to vector<8x16xf32>
    %cst_96 = arith.constant 9.99999993E-9 : f32
    %222 = vector.broadcast %cst_96 : f32 to vector<8x16xf32>
    %223 = arith.maximumf %221, %222 : vector<8x16xf32>
    %224 = math.sqrt %223 : vector<8x16xf32>
    %225 = arith.negf %224 : vector<8x16xf32>
    %226 = math.exp %225 : vector<8x16xf32>
    %cst_97 = arith.constant 1.000000e+00 : f32
    %227 = vector.broadcast %cst_97 : f32 to vector<8x16xf32>
    %228 = arith.addf %227, %226 : vector<8x16xf32>
    %229 = arith.divf %227, %228 : vector<8x16xf32>
    %230 = vector.shape_cast %229 : vector<8x16xf32> to vector<1x8x16xf32>
    %231 = vector.broadcast %230 : vector<1x8x16xf32> to vector<3x8x16xf32>
    %232 = arith.mulf %219, %231 : vector<3x8x16xf32>
    %233 = vector.shape_cast %232 : vector<3x8x16xf32> to vector<24x16xf32>
    %c0_98 = arith.constant 0 : index
    %c0_99 = arith.constant 0 : index
    %234 = vector.load %arg24[%c0_98, %c0_99] : memref<16x24xf32, #tpu.memory_space<vmem>>, vector<16x24xf32>
    %c0_100 = arith.constant 0 : index
    %c0_101 = arith.constant 0 : index
    %235 = vector.load %arg25[%c0_100, %c0_101] : memref<128x32xf32, #tpu.memory_space<vmem>>, vector<128x32xf32>
    %c0_102 = arith.constant 0 : index
    %c0_103 = arith.constant 0 : index
    %236 = vector.load %arg26[%c0_102, %c0_103] : memref<16x32xf32, #tpu.memory_space<vmem>>, vector<16x32xf32>
    %c0_104 = arith.constant 0 : index
    %c0_105 = arith.constant 0 : index
    %237 = vector.load %arg27[%c0_104, %c0_105] : memref<1x32xf32, #tpu.memory_space<vmem>>, vector<1x32xf32>
    %cst_106 = arith.constant dense<0.000000e+00> : vector<24x24xf32>
    %238 = tpu.matmul %233, %234, %cst_106 {dimension_numbers = #tpu.dot_dimension_numbers<[1], [0], [0], [1], [0, 0, 1, 1], [], []>} : vector<24x16xf32>, vector<16x24xf32>, vector<24x24xf32> -> vector<24x24xf32>
    %239 = vector.extract_strided_slice %238 {offsets = [0, 0], sizes = [24, 16], strides = [1, 1]} : vector<24x24xf32> to vector<24x16xf32>
    %240 = vector.shape_cast %239 : vector<24x16xf32> to vector<3x8x16xf32>
    %241 = arith.mulf %240, %240 : vector<3x8x16xf32>
    %cst_107 = arith.constant dense<0.000000e+00> : vector<8x16xf32>
    %242 = vector.multi_reduction <add>, %241, %cst_107 [0] : vector<3x8x16xf32> to vector<8x16xf32>
    %cst_108 = arith.constant 9.99999993E-9 : f32
    %243 = vector.broadcast %cst_108 : f32 to vector<8x16xf32>
    %244 = arith.maximumf %242, %243 : vector<8x16xf32>
    %245 = math.sqrt %244 : vector<8x16xf32>
    %cst_109 = arith.constant dense<0.000000e+00> : vector<8x32xf32>
    %246 = tpu.matmul %217, %235, %cst_109 {dimension_numbers = #tpu.dot_dimension_numbers<[1], [0], [0], [1], [0, 0, 1, 1], [], []>} : vector<8x128xf32>, vector<128x32xf32>, vector<8x32xf32> -> vector<8x32xf32>
    %cst_110 = arith.constant dense<0.000000e+00> : vector<8x32xf32>
    %247 = tpu.matmul %245, %236, %cst_110 {dimension_numbers = #tpu.dot_dimension_numbers<[1], [0], [0], [1], [0, 0, 1, 1], [], []>} : vector<8x16xf32>, vector<16x32xf32>, vector<8x32xf32> -> vector<8x32xf32>
    %248 = arith.addf %246, %247 : vector<8x32xf32>
    %249 = vector.broadcast %237 : vector<1x32xf32> to vector<8x32xf32>
    %250 = arith.addf %248, %249 : vector<8x32xf32>
    %251 = vector.extract_strided_slice %238 {offsets = [0, 16], sizes = [24, 8], strides = [1, 1]} : vector<24x24xf32> to vector<24x8xf32>
    %252 = vector.shape_cast %251 : vector<24x8xf32> to vector<3x8x8xf32>
    %253 = arith.addf %197, %250 : vector<8x32xf32>
    %254 = arith.addf %171, %252 : vector<3x8x8xf32>
    %255 = arith.mulf %254, %254 : vector<3x8x8xf32>
    %cst_111 = arith.constant dense<0.000000e+00> : vector<8x8xf32>
    %256 = vector.multi_reduction <add>, %255, %cst_111 [0] : vector<3x8x8xf32> to vector<8x8xf32>
    %cst_112 = arith.constant 9.99999993E-9 : f32
    %257 = vector.broadcast %cst_112 : f32 to vector<8x8xf32>
    %258 = arith.maximumf %256, %257 : vector<8x8xf32>
    %cst_113 = arith.constant 2.000000e-08 : f32
    %259 = vector.broadcast %cst_113 : f32 to vector<8x8xf32>
    %260 = arith.cmpf ogt, %258, %259 : vector<8x8xf32>
    %261 = arith.extui %260 : vector<8x8xi1> to vector<8x8xi32>
    %262 = arith.sitofp %261 : vector<8x8xi32> to vector<8x8xf32>
    %263 = arith.mulf %258, %262 : vector<8x8xf32>
    %cst_114 = arith.constant dense<0.000000e+00> : vector<8xf32>
    %264 = vector.multi_reduction <add>, %263, %cst_114 [1] : vector<8x8xf32> to vector<8xf32>
    %265 = vector.shape_cast %264 : vector<8xf32> to vector<8x1xf32>
    %cst_115 = arith.constant dense<0.000000e+00> : vector<8xf32>
    %266 = vector.multi_reduction <add>, %262, %cst_115 [1] : vector<8x8xf32> to vector<8xf32>
    %267 = vector.shape_cast %266 : vector<8xf32> to vector<8x1xf32>
    %cst_116 = arith.constant 9.99999993E-9 : f32
    %268 = vector.broadcast %cst_116 : f32 to vector<8x1xf32>
    %269 = arith.addf %268, %267 : vector<8x1xf32>
    %270 = arith.divf %265, %269 : vector<8x1xf32>
    %cst_117 = arith.constant 9.99999993E-9 : f32
    %271 = vector.broadcast %cst_117 : f32 to vector<8x1xf32>
    %272 = arith.addf %270, %271 : vector<8x1xf32>
    %273 = math.rsqrt %272 : vector<8x1xf32>
    %274 = vector.broadcast %273 : vector<8x1xf32> to vector<8x8xf32>
    %275 = arith.mulf %262, %274 : vector<8x8xf32>
    %276 = vector.shape_cast %275 : vector<8x8xf32> to vector<1x8x8xf32>
    %277 = vector.broadcast %276 : vector<1x8x8xf32> to vector<3x8x8xf32>
    %278 = arith.mulf %254, %277 : vector<3x8x8xf32>
    %cst_118 = arith.constant dense<0.000000e+00> : vector<8xf32>
    %279 = vector.multi_reduction <add>, %253, %cst_118 [1] : vector<8x32xf32> to vector<8xf32>
    %280 = vector.shape_cast %279 : vector<8xf32> to vector<8x1xf32>
    %cst_119 = arith.constant 3.200000e+01 : f32
    %281 = vector.broadcast %cst_119 : f32 to vector<8x1xf32>
    %282 = arith.divf %280, %281 : vector<8x1xf32>
    %283 = vector.broadcast %282 : vector<8x1xf32> to vector<8x32xf32>
    %284 = arith.subf %253, %283 : vector<8x32xf32>
    %285 = vector.broadcast %282 : vector<8x1xf32> to vector<8x32xf32>
    %286 = arith.subf %253, %285 : vector<8x32xf32>
    %287 = arith.mulf %284, %286 : vector<8x32xf32>
    %cst_120 = arith.constant dense<0.000000e+00> : vector<8xf32>
    %288 = vector.multi_reduction <add>, %287, %cst_120 [1] : vector<8x32xf32> to vector<8xf32>
    %289 = vector.shape_cast %288 : vector<8xf32> to vector<8x1xf32>
    %cst_121 = arith.constant 3.200000e+01 : f32
    %290 = vector.broadcast %cst_121 : f32 to vector<8x1xf32>
    %291 = arith.divf %289, %290 : vector<8x1xf32>
    %292 = vector.broadcast %282 : vector<8x1xf32> to vector<8x32xf32>
    %293 = arith.subf %253, %292 : vector<8x32xf32>
    %cst_122 = arith.constant 9.99999974E-6 : f32
    %294 = vector.broadcast %cst_122 : f32 to vector<8x1xf32>
    %295 = arith.addf %291, %294 : vector<8x1xf32>
    %296 = math.rsqrt %295 : vector<8x1xf32>
    %297 = vector.broadcast %296 : vector<8x1xf32> to vector<8x32xf32>
    %298 = arith.mulf %293, %297 : vector<8x32xf32>
    %c0_123 = arith.constant 0 : index
    %c0_124 = arith.constant 0 : index
    %299 = vector.load %arg30[%c0_123, %c0_124] : memref<1x32xf32, #tpu.memory_space<vmem>>, vector<1x32xf32>
    %300 = vector.broadcast %299 : vector<1x32xf32> to vector<8x32xf32>
    %301 = arith.mulf %298, %300 : vector<8x32xf32>
    %c0_125 = arith.constant 0 : index
    %c0_126 = arith.constant 0 : index
    %302 = vector.load %arg31[%c0_125, %c0_126] : memref<1x32xf32, #tpu.memory_space<vmem>>, vector<1x32xf32>
    %303 = vector.broadcast %302 : vector<1x32xf32> to vector<8x32xf32>
    %304 = arith.addf %301, %303 : vector<8x32xf32>
    %305 = vector.extract_strided_slice %278 {offsets = [0, 0, 0], sizes = [1, 8, 8], strides = [1, 1, 1]} : vector<3x8x8xf32> to vector<1x8x8xf32>
    %306 = vector.shape_cast %305 : vector<1x8x8xf32> to vector<8x8xf32>
    %307 = vector.extract_strided_slice %278 {offsets = [1, 0, 0], sizes = [1, 8, 8], strides = [1, 1, 1]} : vector<3x8x8xf32> to vector<1x8x8xf32>
    %308 = vector.shape_cast %307 : vector<1x8x8xf32> to vector<8x8xf32>
    %309 = vector.extract_strided_slice %278 {offsets = [2, 0, 0], sizes = [1, 8, 8], strides = [1, 1, 1]} : vector<3x8x8xf32> to vector<1x8x8xf32>
    %310 = vector.shape_cast %309 : vector<1x8x8xf32> to vector<8x8xf32>
    %cst_127 = arith.constant 0.000000e+00 : f32
    %311 = vector.broadcast %cst_127 : f32 to vector<8x72xf32>
    %312 = tpu.concatenate %304, %306, %308, %310, %311 in 1 : vector<8x32xf32>, vector<8x8xf32>, vector<8x8xf32>, vector<8x8xf32>, vector<8x72xf32> -> vector<8x128xf32>
    %c0_128 = arith.constant 0 : index
    %c0_129 = arith.constant 0 : index
    %313 = vector.load %arg32[%c0_128, %c0_129] : memref<8x128xf32, #tpu.memory_space<vmem>>, vector<8x128xf32>
    tpu.vector_store %arg32[%c0_128, %c0_129], %312 {strides = array<i32>} : memref<8x128xf32, #tpu.memory_space<vmem>>, vector<8x128xf32>,
    return
  }
  func.func @transform_0(%arg0: i32) -> (i32, i32, i32) {
    %c0_i32 = arith.constant 0 : i32
    %c0_i32_0 = arith.constant 0 : i32
    %c0_i32_1 = arith.constant 0 : i32
    return %c0_i32, %arg0, %c0_i32_0 : i32, i32, i32
  }
  func.func @transform_1(%arg0: i32) -> (i32, i32, i32, i32) {
    %c0_i32 = arith.constant 0 : i32
    %c0_i32_0 = arith.constant 0 : i32
    %c0_i32_1 = arith.constant 0 : i32
    %c0_i32_2 = arith.constant 0 : i32
    return %c0_i32, %c0_i32_0, %arg0, %c0_i32_1 : i32, i32, i32, i32
  }
  func.func @transform_2(%arg0: i32) -> (i32, i32) {
    %c0_i32 = arith.constant 0 : i32
    %c0_i32_0 = arith.constant 0 : i32
    return %arg0, %c0_i32 : i32, i32
  }
  func.func @transform_3(%arg0: i32) -> (i32, i32) {
    %c0_i32 = arith.constant 0 : i32
    %c0_i32_0 = arith.constant 0 : i32
    return %arg0, %c0_i32 : i32, i32
  }
  func.func @transform_4(%arg0: i32) -> (i32, i32, i32) {
    %c0_i32 = arith.constant 0 : i32
    %c0_i32_0 = arith.constant 0 : i32
    %c0_i32_1 = arith.constant 0 : i32
    return %c0_i32, %arg0, %c0_i32_0 : i32, i32, i32
  }
  func.func @transform_5(%arg0: i32) -> (i32, i32) {
    %c0_i32 = arith.constant 0 : i32
    %c0_i32_0 = arith.constant 0 : i32
    %c0_i32_1 = arith.constant 0 : i32
    return %c0_i32, %c0_i32_0 : i32, i32
  }
  func.func @transform_6(%arg0: i32) -> (i32, i32) {
    %c0_i32 = arith.constant 0 : i32
    %c0_i32_0 = arith.constant 0 : i32
    %c0_i32_1 = arith.constant 0 : i32
    return %c0_i32, %c0_i32_0 : i32, i32
  }
  func.func @transform_7(%arg0: i32) -> (i32, i32) {
    %c0_i32 = arith.constant 0 : i32
    %c0_i32_0 = arith.constant 0 : i32
    %c0_i32_1 = arith.constant 0 : i32
    return %c0_i32, %c0_i32_0 : i32, i32
  }
  func.func @transform_8(%arg0: i32) -> (i32, i32) {
    %c0_i32 = arith.constant 0 : i32
    %c0_i32_0 = arith.constant 0 : i32
    %c0_i32_1 = arith.constant 0 : i32
    return %c0_i32, %c0_i32_0 : i32, i32
  }
  func.func @transform_9(%arg0: i32) -> (i32, i32) {
    %c0_i32 = arith.constant 0 : i32
    %c0_i32_0 = arith.constant 0 : i32
    %c0_i32_1 = arith.constant 0 : i32
    return %c0_i32, %c0_i32_0 : i32, i32
  }
  func.func @transform_10(%arg0: i32) -> (i32, i32) {
    %c0_i32 = arith.constant 0 : i32
    %c0_i32_0 = arith.constant 0 : i32
    %c0_i32_1 = arith.constant 0 : i32
    return %c0_i32, %c0_i32_0 : i32, i32
  }
  func.func @transform_11(%arg0: i32) -> (i32, i32) {
    %c0_i32 = arith.constant 0 : i32
    %c0_i32_0 = arith.constant 0 : i32
    %c0_i32_1 = arith.constant 0 : i32
    return %c0_i32, %c0_i32_0 : i32, i32
  }
  func.func @transform_12(%arg0: i32) -> (i32, i32) {
    %c0_i32 = arith.constant 0 : i32
    %c0_i32_0 = arith.constant 0 : i32
    %c0_i32_1 = arith.constant 0 : i32
    return %c0_i32, %c0_i32_0 : i32, i32
  }
  func.func @transform_13(%arg0: i32) -> (i32, i32) {
    %c0_i32 = arith.constant 0 : i32
    %c0_i32_0 = arith.constant 0 : i32
    %c0_i32_1 = arith.constant 0 : i32
    return %c0_i32, %c0_i32_0 : i32, i32
  }
  func.func @transform_14(%arg0: i32) -> (i32, i32) {
    %c0_i32 = arith.constant 0 : i32
    %c0_i32_0 = arith.constant 0 : i32
    %c0_i32_1 = arith.constant 0 : i32
    return %c0_i32, %c0_i32_0 : i32, i32
  }
  func.func @transform_15(%arg0: i32) -> (i32, i32) {
    %c0_i32 = arith.constant 0 : i32
    %c0_i32_0 = arith.constant 0 : i32
    %c0_i32_1 = arith.constant 0 : i32
    return %c0_i32, %c0_i32_0 : i32, i32
  }
  func.func @transform_16(%arg0: i32) -> (i32, i32) {
    %c0_i32 = arith.constant 0 : i32
    %c0_i32_0 = arith.constant 0 : i32
    %c0_i32_1 = arith.constant 0 : i32
    return %c0_i32, %c0_i32_0 : i32, i32
  }
  func.func @transform_17(%arg0: i32) -> (i32, i32) {
    %c0_i32 = arith.constant 0 : i32
    %c0_i32_0 = arith.constant 0 : i32
    %c0_i32_1 = arith.constant 0 : i32
    return %c0_i32, %c0_i32_0 : i32, i32
  }
  func.func @transform_18(%arg0: i32) -> (i32, i32) {
    %c0_i32 = arith.constant 0 : i32
    %c0_i32_0 = arith.constant 0 : i32
    %c0_i32_1 = arith.constant 0 : i32
    return %c0_i32, %c0_i32_0 : i32, i32
  }
  func.func @transform_19(%arg0: i32) -> (i32, i32) {
    %c0_i32 = arith.constant 0 : i32
    %c0_i32_0 = arith.constant 0 : i32
    %c0_i32_1 = arith.constant 0 : i32
    return %c0_i32, %c0_i32_0 : i32, i32
  }
  func.func @transform_20(%arg0: i32) -> (i32, i32) {
    %c0_i32 = arith.constant 0 : i32
    %c0_i32_0 = arith.constant 0 : i32
    %c0_i32_1 = arith.constant 0 : i32
    return %c0_i32, %c0_i32_0 : i32, i32
  }
  func.func @transform_21(%arg0: i32) -> (i32, i32) {
    %c0_i32 = arith.constant 0 : i32
    %c0_i32_0 = arith.constant 0 : i32
    %c0_i32_1 = arith.constant 0 : i32
    return %c0_i32, %c0_i32_0 : i32, i32
  }
  func.func @transform_22(%arg0: i32) -> (i32, i32) {
    %c0_i32 = arith.constant 0 : i32
    %c0_i32_0 = arith.constant 0 : i32
    %c0_i32_1 = arith.constant 0 : i32
    return %c0_i32, %c0_i32_0 : i32, i32
  }
  func.func @transform_23(%arg0: i32) -> (i32, i32) {
    %c0_i32 = arith.constant 0 : i32
    %c0_i32_0 = arith.constant 0 : i32
    %c0_i32_1 = arith.constant 0 : i32
    return %c0_i32, %c0_i32_0 : i32, i32
  }
  func.func @transform_24(%arg0: i32) -> (i32, i32) {
    %c0_i32 = arith.constant 0 : i32
    %c0_i32_0 = arith.constant 0 : i32
    %c0_i32_1 = arith.constant 0 : i32
    return %c0_i32, %c0_i32_0 : i32, i32
  }
  func.func @transform_25(%arg0: i32) -> (i32, i32) {
    %c0_i32 = arith.constant 0 : i32
    %c0_i32_0 = arith.constant 0 : i32
    %c0_i32_1 = arith.constant 0 : i32
    return %c0_i32, %c0_i32_0 : i32, i32
  }
  func.func @transform_26(%arg0: i32) -> (i32, i32) {
    %c0_i32 = arith.constant 0 : i32
    %c0_i32_0 = arith.constant 0 : i32
    %c0_i32_1 = arith.constant 0 : i32
    return %c0_i32, %c0_i32_0 : i32, i32
  }
  func.func @transform_27(%arg0: i32) -> (i32, i32) {
    %c0_i32 = arith.constant 0 : i32
    %c0_i32_0 = arith.constant 0 : i32
    %c0_i32_1 = arith.constant 0 : i32
    return %c0_i32, %c0_i32_0 : i32, i32
  }
  func.func @transform_28(%arg0: i32) -> (i32, i32) {
    %c0_i32 = arith.constant 0 : i32
    %c0_i32_0 = arith.constant 0 : i32
    %c0_i32_1 = arith.constant 0 : i32
    return %c0_i32, %c0_i32_0 : i32, i32
  }
  func.func @transform_29(%arg0: i32) -> (i32, i32) {
    %c0_i32 = arith.constant 0 : i32
    %c0_i32_0 = arith.constant 0 : i32
    %c0_i32_1 = arith.constant 0 : i32
    return %c0_i32, %c0_i32_0 : i32, i32
  }
  func.func @transform_30(%arg0: i32) -> (i32, i32) {
    %c0_i32 = arith.constant 0 : i32
    %c0_i32_0 = arith.constant 0 : i32
    %c0_i32_1 = arith.constant 0 : i32
    return %c0_i32, %c0_i32_0 : i32, i32
  }
  func.func @transform_31(%arg0: i32) -> (i32, i32) {
    %c0_i32 = arith.constant 0 : i32
    %c0_i32_0 = arith.constant 0 : i32
    return %arg0, %c0_i32 : i32, i32
  }
}

</mosaic_0001>

<bundles_post_ra>
// kernel: gvp_conv_layer_forward.1
= control target key start
LH: loop header
LB: loop body
LE: loop exit
PB: predicated region body
PF: predicated region fallthrough
CT: control target
= control target key end

     0   :  { %v3071_v0 = vmov 0.0   ;;  %s3072_s3 = smov 5   ;;  %vm3073_vm0 = vmmov 0   ;;  %s3074_s7 = smov 1   ;;  %vm191_vm1 = vcmask 1043456   ;;  %vm163_vm2 = vcmask 97280   ;;  %s3834_s0 = inlined_call_operand.smem [shape: u32[32], index: -1, kind: input, shape index: {}] }
   0x1   :  { %2655 = vmatprep.subr.mxu0 %v3071_v0  ;;  %2942 = vmatprep.subr.mxu1 %v3071_v0  ;;  %s2436_s6 = sld [smem:[%s3834_s0 + %s3072_s3]]   ;;  %s3075_s11 = smov 6   ;;  %vm305_vm3 = vcmask 64512   ;;  %vm413_vm4 = vcmask 162816   ;;  %vm724_vm5 = vcmask 228512  }
   0x2   :  { %2659 = vmatprep.mubr.msk.f32.mxu0 %vm3073_vm0, %v3071_v0  ;;  %2677 = vmatprep.mubr.msk.f32.mxu1 %vm3073_vm0, %v3071_v0  ;;  %s3130_s10 = sld [smem:[%s3834_s0 + %s3074_s7]]   ;;  %s3076_s15 = smov 4  }
   0x3   :  { %s2437_s14 = sld [smem:[%s3834_s0 + %s3075_s11]]   ;;  %s3077_s19 = smov 9  }
   0x4   :  { %s3151_s18 = sld [smem:[%s3834_s0 + %s3076_s15]]   ;;  %s3078_s23 = smov 11  }
   0x5   :  { %s2440_s22 = sld [smem:[%s3834_s0 + %s3077_s19]]   ;;  %s3079_s27 = smov 7  }
   0x6   :  { %s2442_s26 = sld [smem:[%s3834_s0 + %s3078_s23]]   ;;  %s3080_s4 = smov 8  }
   0x7   :  { %v147_v1 = vld [vmem:[%s2436_s6 + $0x8] sm:$0xf]  ;;  %v146_v2 = vld [vmem:[%s2436_s6] sm:$0xff]  ;;  %s3269_s30 = sld [smem:[%s3834_s0 + %s3079_s27]]   ;;  %s3081_s8 = smov 3  }
   0x8   :  { %2656 = vmatpush3.msk.msra.mxu0 %vm191_vm1, %v147_v1  ;;  %2944 = vmatpush3.msk.msra.mxu1 %vm191_vm1, %v147_v1  ;;  %v133_v3 = vld [vmem:[%s3130_s10] sm:$0xff]  ;;  %v139_v4 = vld [vmem:[%s3130_s10 + $0x30] sm:$0xff]  ;;  %v134_v6 = vld [vmem:[%s3130_s10 + $0x8] sm:$0xff]  ;;  %s3290_s3 = sld [smem:[%s3834_s0]]   ;;  %s3082_s12 = smov 108  }
   0x9   :  { %2657 = vmatprep.subr.mxu0 %v3071_v0  ;;  %2943 = vmatprep.subr.mxu1 %v3071_v0  ;;  %v148_v5 = vld [vmem:[%s2437_s14] sm:$0xff]  ;;  %v140_v7 = vld [vmem:[%s3130_s10 + $0x38] sm:$0xff]  ;;  %v135_v8 = vld [vmem:[%s3130_s10 + $0x10] sm:$0xff]  ;;  %s3301_s7 = sld [smem:[%s3834_s0 + %s3080_s4]]   ;;  %s3083_s13 = smov 10  }
   0xa   :  { %2658 = vmatpush3.msra.mxu0 %v146_v2  ;;  %2945 = vmatpush3.msra.mxu1 %v146_v2  ;;  %v141_v9 = vld [vmem:[%s3130_s10 + $0x40] sm:$0xff]  ;;  %v136_v10 = vld [vmem:[%s3130_s10 + $0x18] sm:$0xff]  ;;  %v144_v13 = vld [vmem:[%s3151_s18 + $0x8] sm:$0xff]  ;;  %s2434_s11 = sld [smem:[%s3834_s0 + %s3081_s8]]   ;;  %s3084_s17 = smov 13  }
   0xb   :  { %2660 = vmatmul.mubr.msk.f32.vlgmr.msra.gmra.mxu0 %vm163_vm2, %v133_v3  ;;  %2678 = vmatmul.mubr.msk.f32.vlgmr.msra.gmra.mxu1 %vm163_vm2, %v139_v4  ;;  %v143_v11 = vld [vmem:[%s3151_s18] sm:$0xff]  ;;  %v138_v14 = vld [vmem:[%s3130_s10 + $0x28] sm:$0xff]  ;;  %v145_v15 = vld [vmem:[%s3151_s18 + $0x10] sm:$0xff]  ;;  %s2441_s16 = sld [smem:[%s3834_s0 + %s3083_s13]]   ;;  %s3088_s1 = smov 2  }
   0xc   :  { %2686 = vmatprep.subr.mxu1 %v3071_v0  ;;  %2662 = vmatprep.mubr.msk.f32.mxu0 %vm3073_vm0, %v3071_v0  ;;  %v137_v12 = vld [vmem:[%s3130_s10 + $0x20] sm:$0xff]  ;;  %v161_v16 = vld [vmem:[%s2440_s22 + $0x10] sm:$0xf]  ;;  %v160_v17 = vld [vmem:[%s2440_s22 + $0x8] sm:$0xff]  ;;  %s2444_s21 = sld [smem:[%s3834_s0 + %s3084_s17]]   ;;  %s3092_s5 = smov 17  }
   0xd   :  { %2687 = vmatpush3.msra.mxu1 %v148_v5  ;;  %2680 = vmatprep.mubr.msk.f32.mxu1 %vm3073_vm0, %v3071_v0  ;;  %v159_v18 = vld [vmem:[%s2440_s22] sm:$0xff]  ;;  %s3085_s22 = smov 12   ;;  %s2433_s4 = sld [smem:[%s3834_s0 + %s3088_s1]]  }
   0xe   :  { %2697 = vmatprep.subr.mxu1 %v3071_v0  ;;  %2744 = vmatprep.subr.mxu0 %v3071_v0  ;;  %v791_v19 = vld [vmem:[%s2442_s26] sm:$0xff]  ;;  %s3461_s25 = sld [smem:[%s3834_s0 + %s3085_s22]]   ;;  %s3086_s26 = smov 15  }
   0xf   :  { %2663 = vmatmul.mubr.msk.f32.gmra.mxu0 %vm163_vm2, %v134_v6  ;;  %2681 = vmatmul.mubr.msk.f32.gmra.mxu1 %vm163_vm2, %v140_v7  ;;  %s3474_s29 = sld [smem:[%s3834_s0 + %s3086_s26]]   ;;  %s3093_s9 = smov 16  }
  0x10   :  { %2665 = vmatprep.mubr.msk.f32.mxu0 %vm3073_vm0, %v3071_v0  ;;  %2683 = vmatprep.mubr.msk.f32.mxu1 %vm3073_vm0, %v3071_v0  ;;  %s2448_s8 = sld [smem:[%s3834_s0 + %s3092_s5]]   ;;  %s3094_s13 = smov 14  }
  0x11   :  { %2745 = vmatpush3.msra.mxu0 %v791_v19  ;;  %s3102_s15 = smov 112   ;;  %s3110_s5 = smov 29  }
  0x12   :  { %2830 = vmatprep.subr.mxu0 %v3071_v0 }
  0x13   :  { %2666 = vmatmul.mubr.msk.f32.gmra.mxu0 %vm163_vm2, %v135_v8  ;;  %2684 = vmatmul.mubr.msk.f32.gmra.mxu1 %vm163_vm2, %v141_v9 }
  0x14   :  { %2668 = vmatprep.mubr.msk.f32.mxu0 %vm3073_vm0, %v3071_v0  ;;  %2688 = vmatprep.mubr.msk.f32.mxu1 %vm3073_vm0, %v3071_v0 }
  0x17   :  { %2669 = vmatmul.mubr.msk.f32.gmra.mxu0 %vm163_vm2, %v136_v10  ;;  %2689 = vmatmul.mubr.msk.f32.vlgmr.msra.gmra.mxu1 %vm305_vm3, %v143_v11 }
  0x18   :  { %2671 = vmatprep.mubr.msk.f32.mxu0 %vm3073_vm0, %v3071_v0  ;;  %2691 = vmatprep.mubr.msk.f32.mxu1 %vm3073_vm0, %v3071_v0 }
  0x19   :  { %2698 = vmatpush3.msk.msra.mxu1 %vm191_vm1, %v161_v16 }
  0x1a   :  { %2699 = vmatprep.subr.mxu1 %v3071_v0 }
  0x1b   :  { %2672 = vmatmul.mubr.msk.f32.gmra.mxu0 %vm163_vm2, %v137_v12  ;;  %2692 = vmatmul.mubr.msk.f32.gmra.mxu1 %vm305_vm3, %v144_v13 }
  0x1c   :  { %2674 = vmatprep.mubr.msk.f32.mxu0 %vm3073_vm0, %v3071_v0  ;;  %2694 = vmatprep.mubr.msk.f32.mxu1 %vm3073_vm0, %v3071_v0 }
  0x1d   :  { %2700 = vmatpush3.msra.mxu1 %v160_v17 }
  0x1e   :  { %2701 = vmatprep.subr.mxu1 %v3071_v0 }
  0x1f   :  { %2675 = vmatmul.mubr.msk.f32.gmra.mxu0 %vm163_vm2, %v138_v14  ;;  %2695 = vmatmul.mubr.msk.f32.gmra.mxu1 %vm305_vm3, %v145_v15 }
  0x20   :  { %2703 = vmatprep.mubr.msk.f32.mxu1 %vm3073_vm0, %v3071_v0  ;;  %2746 = vmatprep.mubr.msk.f32.mxu0 %vm3073_vm0, %v3071_v0 }
  0x21   :  { %2702 = vmatpush3.msra.mxu1 %v159_v18 }
  0x22   :  { %2712 = vmatprep.subr.mxu1 %v3071_v0 }
  0xcb   :  { %v261_v20 = vpop.f32.mrf.mxu0  ;;  %v291_v21 = vpop.f32.mrf.mxu1 }
  0xcd   :  { %v2661_v22 = vpop.f32.mrf.mxu0  ;;  %v2679_v23 = vpop.f32.mrf.mxu1 }
  0xcf   :  { %v266_v24 = vpop.f32.mrf.mxu0  ;;  %v296_v25 = vpop.f32.mrf.mxu1 }
  0xd1   :  { %v2664_v26 = vpop.f32.mrf.mxu0  ;;  %v2682_v27 = vpop.f32.mrf.mxu1 }
  0xd3   :  { %v271_v28 = vpop.f32.mrf.mxu0  ;;  %v301_v29 = vpop.f32.mrf.mxu1 }
  0xd5   :  { %v2667_v30 = vpop.f32.mrf.mxu0  ;;  %v2685_v31 = vpop.f32.mrf.mxu1 }
  0xd7   :  { %v276_v32 = vpop.f32.mrf.mxu0  ;;  %v381_v33 = vpop.f32.mrf.mxu1 }
  0xd8   :  { %v3206_v34 = vadd.f32 %v381_v33, %v261_v20  ;;  %v3208_v35 = vadd.f32 %v381_v33, %v266_v24  ;;  %v3210_v38 = vadd.f32 %v381_v33, %v271_v28 }
  0xd9   :  { %v2670_v36 = vpop.f32.mrf.mxu0  ;;  %v2690_v37 = vpop.f32.mrf.mxu1 }
  0xda   :  { %v404_v39 = vmul.f32 %v3206_v34, %v3206_v34  ;;  %v405_v42 = vmul.f32 %v3208_v35, %v3208_v35  ;;  %v406_v47 = vmul.f32 %v3210_v38, %v3210_v38 }
  0xdb   :  { %v281_v40 = vpop.f32.mrf.mxu0  ;;  %v386_v41 = vpop.f32.mrf.mxu1 }
  0xdc   :  { %v3216_v43 = vadd.f32 %v386_v41, %v276_v32  ;;  %v3218_v44 = vadd.f32 %v386_v41, %v281_v40  ;;  %v414_v48 = vsel %vm413_vm4, %v404_v39, 0.0  ;;  %v419_v57 = vsel %vm413_vm4, %v405_v42, 0.0 }
  0xdd   :  { %v2673_v45 = vpop.f32.mrf.mxu0  ;;  %v2693_v46 = vpop.f32.mrf.mxu1  ;;  %v725_v63 = vsel %vm724_vm5, %v404_v39, 0.0  ;;  %v730_v1 = vsel %vm724_vm5, %v405_v42, 0.0  ;;  %v424_v3 = vsel %vm413_vm4, %v406_v47, 0.0  ;;  %v735_v11 = vsel %vm724_vm5, %v406_v47, 0.0 }
  0xde   :  { %v407_v49 = vmul.f32 %v3216_v43, %v3216_v43  ;;  %v408_v50 = vmul.f32 %v3218_v44, %v3218_v44 }
  0xdf   :  { %v286_v51 = vpop.f32.mrf.mxu0  ;;  %v391_v52 = vpop.f32.mrf.mxu1 }
  0xe0   :  { %v3227_v53 = vadd.f32 %v386_v41, %v286_v51  ;;  %v3229_v54 = vadd.f32 %v391_v52, %v291_v21  ;;  %v3231_v55 = vadd.f32 %v391_v52, %v296_v25  ;;  %v3233_v56 = vadd.f32 %v391_v52, %v301_v29 }
  0xe1   :  { %v415_v58 = vsel %vm413_vm4, %v407_v49, 0.0  ;;  %v420_v59 = vsel %vm413_vm4, %v408_v50, 0.0  ;;  %v726_v60 = vsel %vm724_vm5, %v407_v49, 0.0  ;;  %v2696_v61 = vpop.f32.mrf.mxu1  ;;  %v2676_v62 = vpop.f32.mrf.mxu0  ;;  %v731_v2 = vsel %vm724_vm5, %v408_v50, 0.0  ;;  %v154_v49 = vld [vmem:[%s3269_s30 + $0x28] sm:$0xff] }
  0xe2   :  { %v409_v4 = vmul.f32 %v3227_v53, %v3227_v53  ;;  %v410_v5 = vmul.f32 %v3229_v54, %v3229_v54  ;;  %v411_v6 = vmul.f32 %v3231_v55, %v3231_v55  ;;  %v412_v7 = vmul.f32 %v3233_v56, %v3233_v56  ;;  %v153_v61 = vld [vmem:[%s3269_s30 + $0x20] sm:$0xff] }
  0xe3   :  { %v416_v8 = vadd.f32 %v415_v58, %v414_v48  ;;  %v421_v9 = vadd.f32 %v420_v59, %v419_v57  ;;  %v727_v10 = vadd.f32 %v726_v60, %v725_v63  ;;  %v732_v16 = vadd.f32 %v731_v2, %v730_v1 }
  0xe4   :  { %v425_v12 = vsel %vm413_vm4, %v409_v4, 0.0  ;;  %v736_v13 = vsel %vm724_vm5, %v409_v4, 0.0  ;;  %v417_v14 = vsel %vm413_vm4, %v410_v5, 0.0  ;;  %v422_v15 = vsel %vm413_vm4, %v411_v6, 0.0 }
  0xe5   :  { %v426_v17 = vadd.f32 %v425_v12, %v424_v3  ;;  %v737_v18 = vadd.f32 %v736_v13, %v735_v11  ;;  %v418_v19 = vadd.f32 %v417_v14, %v416_v8  ;;  %v423_v20 = vadd.f32 %v422_v15, %v421_v9  ;;  %v152_v11 = vld [vmem:[%s3269_s30 + $0x18] sm:$0xff]  ;;  %v151_v14 = vld [vmem:[%s3269_s30 + $0x10] sm:$0xff] }
  0xe6   :  { %v427_v21 = vsel %vm413_vm4, %v412_v7, 0.0  ;;  %v728_v22 = vsel %vm724_vm5, %v410_v5, 0.0  ;;  %v733_v23 = vsel %vm724_vm5, %v411_v6, 0.0  ;;  %v738_v27 = vsel %vm724_vm5, %v412_v7, 0.0 }
  0xe7   :  { %v428_v24 = vadd.f32 %v427_v21, %v426_v17  ;;  %v429_v25 = vmax.f32 %v418_v19, 1e-08  ;;  %v729_v26 = vadd.f32 %v728_v22, %v727_v10  ;;  %v734_v28 = vadd.f32 %v733_v23, %v732_v16  ;;  %v150_v17 = vld [vmem:[%s3269_s30 + $0x8] sm:$0xff]  ;;  %v149_v19 = vld [vmem:[%s3269_s30] sm:$0xff]  ;;  %v158_v21 = vld [vmem:[%s3301_s7 + $0x18] sm:$0xff]  ;;  %s3087_s30 = smov 120  }
  0xe8   :  { %v739_v29 = vadd.f32 %v738_v27, %v737_v18  ;;  %v3260_v31 = vmax.f32 %v423_v20, 1e-08  ;;  %v130_v20 = vld [vmem:[%s3290_s3] sm:$0xff]  ;;  %vm545_vm5 = vcmask 392192   ;;  %v157_v22 = vld [vmem:[%s3301_s7 + $0x10] sm:$0xff]  ;;  %v131_v23 = vld [vmem:[%s3290_s3 + $0x8] sm:$0xff] }
  0xe9   :  { %2992 = vrsqrt.f32 %v429_v25  ;;  %v740_v30 = vmax.f32 %v729_v26, 1e-08  ;;  %v741_v32 = vmax.f32 %v734_v28, 1e-08  ;;  %v3262_v36 = vmax.f32 %v428_v24, 1e-08 }
  0xea   :  { %v742_v33 = vmax.f32 %v739_v29, 1e-08  ;;  %vm434_vm6 = vcmp.eq.f32.partialorder %v429_v25, inf  ;;  %vm436_vm7 = vcmp.eq.f32.partialorder %v429_v25, 0.0  ;;  %v437_v40 = vand.u32 2147483648, %v429_v25  ;;  %v156_v24 = vld [vmem:[%s3301_s7 + $0x8] sm:$0xff] }
  0xeb   :  { %2994 = vrsqrt.f32 %v740_v30  ;;  %vm745_vm8 = vcmp.eq.f32.partialorder %v740_v30, inf  ;;  %vm747_vm9 = vcmp.eq.f32.partialorder %v740_v30, 0.0  ;;  %v748_v42 = vand.u32 2147483648, %v740_v30  ;;  %v155_v26 = vld [vmem:[%s3301_s7] sm:$0xff]  ;;  %v132_v28 = vld [vmem:[%s3290_s3 + $0x10] sm:$0xff]  ;;  %s3099_s3 = smov 20  }
  0xec   :  { %2996 = vrsqrt.f32 %v741_v32  ;;  %vm752_vm10 = vcmp.eq.f32.partialorder %v741_v32, inf  ;;  %vm754_vm11 = vcmp.eq.f32.partialorder %v741_v32, 0.0  ;;  %v755_v47 = vand.u32 2147483648, %v741_v32  ;;  %s3717_s6 = sld [smem:[%s3834_s0 + %s3099_s3]]   ;;  %s3100_s7 = smov 27  }
  0xed   :  { %2998 = vrsqrt.f32 %v742_v33  ;;  %vm759_vm12 = vcmp.eq.f32.partialorder %v742_v33, inf  ;;  %vm761_vm13 = vcmp.eq.f32.partialorder %v742_v33, 0.0  ;;  %v762_v60 = vand.u32 2147483648, %v742_v33  ;;  %s2458_s10 = sld [smem:[%s3834_s0 + %s3100_s7]]   ;;  %s3108_s3 = smov 40  }
  0xee   :  { %3000 = vrsqrt.f32 %v3260_v31  ;;  %vm441_vm14 = vcmp.eq.f32.partialorder %v3260_v31, inf  ;;  %v444_v3 = vand.u32 2147483648, %v3260_v31  ;;  %vm443_vm15 = vcmp.eq.f32.partialorder %v3260_v31, 0.0 }
  0xef   :  { %3002 = vrsqrt.f32 %v3262_v36  ;;  %vm448_vm1 = vcmp.eq.f32.partialorder %v3262_v36, inf  ;;  %v451_v16 = vand.u32 2147483648, %v3262_v36  ;;  %vm450_vm2 = vcmp.eq.f32.partialorder %v3262_v36, 0.0 }
  0xf6   :  { %v2993_v37 = vpop.eup %2992 }
  0xf7   :  { %v433_v39 = vmul.f32 %v2993_v37, %v429_v25 }
  0xf8   :  { %v2995_v41 = vpop.eup %2994 }
  0xf9   :  { %v2997_v45 = vpop.eup %2996  ;;  %v744_v46 = vmul.f32 %v2995_v41, %v740_v30  ;;  %v435_v48 = vsel %vm434_vm6, %v429_v25, %v433_v39  ;;  %vm1191_vm6 = vcmask 130112  }
  0xfa   :  { %v2999_v50 = vpop.eup %2998  ;;  %v751_v51 = vmul.f32 %v2997_v45, %v741_v32  ;;  %v438_v52 = vsel %vm436_vm7, %v437_v40, %v435_v48 }
  0xfb   :  { %v3001_v57 = vpop.eup %3000  ;;  %v746_v58 = vsel %vm745_vm8, %v740_v30, %v744_v46  ;;  %v758_v59 = vmul.f32 %v2999_v50, %v742_v33  ;;  %2704 = vmatmul.mubr.msk.f32.vlgmr.msra.gmra.mxu1 %vm413_vm4, %v438_v52 }
  0xfc   :  { %v3003_v62 = vpop.eup %3002  ;;  %v749_v63 = vsel %vm747_vm9, %v748_v42, %v746_v58  ;;  %v753_v1 = vsel %vm752_vm10, %v741_v32, %v751_v51  ;;  %2713 = vmatpush3.msra.mxu1 %v154_v49  ;;  %2706 = vmatprep.mubr.msk.f32.mxu1 %vm3073_vm0, %v3071_v0  ;;  %v440_v2 = vmul.f32 %v3001_v57, %v3260_v31 }
  0xfd   :  { %v756_v4 = vsel %vm754_vm11, %v755_v47, %v753_v1  ;;  %v760_v5 = vsel %vm759_vm12, %v742_v33, %v758_v59  ;;  %v2485_v6 = vmul.f32 -1.442695, %v749_v63  ;;  %2714 = vmatprep.subr.mxu1 %v3071_v0  ;;  %v447_v7 = vmul.f32 %v3003_v62, %v3262_v36  ;;  %v3344_v33 = vld [vmem:[%s2434_s11] sm:$0xff]  ;;  %s3101_s11 = smov 28  }
  0xfe   :  { %v763_v8 = vsel %vm761_vm13, %v762_v60, %v760_v5  ;;  %v2486_v9 = vmul.f32 -1.442695, %v756_v4  ;;  %2715 = vmatpush3.msra.mxu1 %v153_v61  ;;  %v442_v10 = vsel %vm441_vm14, %v3260_v31, %v440_v2  ;;  %v2483_v4 = vld [vmem:[%s2441_s16] ss:$0 sm:$0xff]  ;;  %s2445_s16 = sld [smem:[%s3834_s0 + %s3094_s13]]   ;;  %s3112_s13 = smov 31  }
  0xff   :  { %3004 = vpow2.f32 %v2485_v6  ;;  %v2487_v12 = vmul.f32 -1.442695, %v763_v8  ;;  %v445_v13 = vsel %vm443_vm15, %v444_v3, %v442_v10  ;;  %2716 = vmatprep.subr.mxu1 %v3071_v0  ;;  %v449_v15 = vsel %vm448_vm1, %v3262_v36, %v447_v7  ;;  %s2459_s14 = sld [smem:[%s3834_s0 + %s3101_s11]]  }
 0x100   :  { %3006 = vpow2.f32 %v2486_v9  ;;  %2707 = vmatmul.mubr.msk.f32.gmra.mxu1 %vm413_vm4, %v445_v13  ;;  %v452_v18 = vsel %vm450_vm2, %v451_v16, %v449_v15  ;;  %v796_v16 = vld [vmem:[%s2444_s21] sm:$0xff]  ;;  %s3096_s21 = smov 18  }
 0x101   :  { %3008 = vpow2.f32 %v2487_v12  ;;  %2717 = vmatpush3.msra.mxu1 %v152_v11  ;;  %2709 = vmatprep.mubr.msk.f32.mxu1 %vm3073_vm0, %v3071_v0  ;;  %s2449_s24 = sld [smem:[%s3834_s0 + %s3096_s21]]  }
 0x102   :  { %2718 = vmatprep.subr.mxu1 %v3071_v0 }
 0x103   :  { %2719 = vmatpush3.msra.mxu1 %v151_v14 }
 0x104   :  { %2710 = vmatmul.mubr.msk.f32.gmra.mxu1 %vm413_vm4, %v452_v18  ;;  %2720 = vmatprep.subr.mxu1 %v3071_v0  ;;  %vm644_vm4 = vcmask 261120  }
 0x105   :  { %2721 = vmatpush3.msra.mxu1 %v150_v17  ;;  %2724 = vmatprep.mubr.msk.f32.mxu1 %vm3073_vm0, %v3071_v0 }
 0x106   :  { %2722 = vmatprep.subr.mxu1 %v3071_v0 }
 0x107   :  { %2723 = vmatpush3.msra.mxu1 %v149_v19 }
 0x108   :  { %2725 = vmatmul.mubr.msk.f32.vlgmr.msra.gmra.mxu1 %vm545_vm5, %v130_v20  ;;  %2733 = vmatprep.subr.mxu1 %v3071_v0 }
 0x109   :  { %2727 = vmatprep.mubr.msk.f32.mxu1 %vm3073_vm0, %v3071_v0  ;;  %2734 = vmatpush3.msra.mxu1 %v158_v21 }
 0x10a   :  { %2735 = vmatprep.subr.mxu1 %v3071_v0 }
 0x10b   :  { %2736 = vmatpush3.msra.mxu1 %v157_v22 }
 0x10c   :  { %v3005_v25 = vpop.eup %3004  ;;  %2728 = vmatmul.mubr.msk.f32.gmra.mxu1 %vm545_vm5, %v131_v23  ;;  %2737 = vmatprep.subr.mxu1 %v3071_v0 }
 0x10d   :  { %v3007_v27 = vpop.eup %3006  ;;  %2730 = vmatprep.mubr.msk.f32.mxu1 %vm3073_vm0, %v3071_v0  ;;  %2738 = vmatpush3.msra.mxu1 %v156_v24  ;;  %v773_v29 = vadd.f32 1.0, %v3005_v25 }
 0x10e   :  { %v3009_v30 = vpop.eup %3008  ;;  %v774_v31 = vadd.f32 1.0, %v3007_v27  ;;  %2739 = vmatprep.subr.mxu1 %v3071_v0 }
 0x10f   :  { %2740 = vmatpush3.msra.mxu1 %v155_v26  ;;  %3010 = vrcp.f32 %v773_v29  ;;  %v775_v32 = vadd.f32 1.0, %v3009_v30 }
 0x110   :  { %3012 = vrcp.f32 %v774_v31  ;;  %2731 = vmatmul.mubr.msk.f32.gmra.mxu1 %vm545_vm5, %v132_v28  ;;  %2773 = vmatprep.subr.mxu1 %v3071_v0 }
 0x111   :  { %2741 = vmatprep.mubr.msk.f32.mxu1 %vm3073_vm0, %v3071_v0  ;;  %3014 = vrcp.f32 %v775_v32 }
 0x114   :  { %2742 = vmatmul.mubr.msk.f32.vlgmr.msra.gmra.mxu1 %vm644_vm4, %v3344_v33 }
 0x115   :  { %2775 = vmatprep.mubr.msk.f32.mxu1 %vm3073_vm0, %v3071_v0  ;;  %2774 = vmatpush3.msra.mxu1 %v796_v16 }
 0x116   :  { %2784 = vmatprep.subr.mxu1 %v3071_v0 }
 0x11c   :  { %v3011_v36 = vpop.eup %3010 }
 0x11d   :  { %v3013_v37 = vpop.eup %3012  ;;  %v782_v39 = vmul.f32 %v3011_v36, %v3206_v34  ;;  %v785_v45 = vmul.f32 %v3011_v36, %v3216_v43  ;;  %v788_v34 = vmul.f32 %v3011_v36, %v3229_v54 }
 0x11e   :  { %v3015_v40 = vpop.eup %3014  ;;  %v783_v42 = vmul.f32 %v3013_v37, %v3208_v35  ;;  %v786_v46 = vmul.f32 %v3013_v37, %v3218_v44  ;;  %v789_v48 = vmul.f32 %v3013_v37, %v3231_v55 }
 0x11f   :  { %807 = vrot.lane.b32.xlu0 %v782_v39, %s3082_s12  ;;  %v784_v41 = vmul.f32 %v3015_v40, %v3210_v38  ;;  %v787_v47 = vmul.f32 %v3015_v40, %v3227_v53  ;;  %v790_v38 = vmul.f32 %v3015_v40, %v3233_v56 }
 0x121   :  { %811 = vrot.lane.b32.xlu1 %v784_v41, %s3082_s12 }
 0x123   :  { %809 = vrot.lane.b32.xlu0 %v783_v42, %s3082_s12 }
 0x125   :  { %813 = vrot.lane.b32.xlu1 %v785_v45, %s3082_s12 }
 0x127   :  { %815 = vrot.lane.b32.xlu0 %v786_v46, %s3082_s12 }
 0x129   :  { %817 = vrot.lane.b32.xlu1 %v787_v47, %s3082_s12 }
 0x12b   :  { %819 = vrot.lane.b32.xlu0 %v788_v34, %s3082_s12 }
 0x12d   :  { %821 = vrot.lane.b32.xlu1 %v789_v48, %s3082_s12 }
 0x12f   :  { %823 = vrot.lane.b32.xlu0 %v790_v38, %s3082_s12  ;;  %s2447_s12 = sld [smem:[%s3834_s0 + %s3093_s9]]   ;;  %s3111_s9 = smov 30  }
 0x191   :  { %v808_v35 = vpop.permute.xlu0 %807 }
 0x192   :  { %2747 = vmatmul.mubr.msk.f32.vlgmr.msra.gmra.mxu0 %vm305_vm3, %v808_v35 }
 0x193   :  { %2749 = vmatprep.mubr.msk.f32.mxu0 %vm3073_vm0, %v3071_v0  ;;  %v812_v44 = vpop.permute.xlu1 %811 }
 0x195   :  { %v810_v43 = vpop.permute.xlu0 %809 }
 0x196   :  { %2750 = vmatmul.mubr.msk.f32.gmra.mxu0 %vm305_vm3, %v810_v43 }
 0x197   :  { %2752 = vmatprep.mubr.msk.f32.mxu0 %vm3073_vm0, %v3071_v0  ;;  %v814_v53 = vpop.permute.xlu1 %813 }
 0x199   :  { %v816_v54 = vpop.permute.xlu0 %815 }
 0x19a   :  { %2753 = vmatmul.mubr.msk.f32.gmra.mxu0 %vm305_vm3, %v812_v44 }
 0x19b   :  { %2755 = vmatprep.mubr.msk.f32.mxu0 %vm3073_vm0, %v3071_v0  ;;  %v818_v55 = vpop.permute.xlu1 %817 }
 0x19d   :  { %v820_v56 = vpop.permute.xlu0 %819 }
 0x19e   :  { %2756 = vmatmul.mubr.msk.f32.gmra.mxu0 %vm305_vm3, %v814_v53 }
 0x19f   :  { %2758 = vmatprep.mubr.msk.f32.mxu0 %vm3073_vm0, %v3071_v0  ;;  %v822_v49 = vpop.permute.xlu1 %821 }
 0x1a1   :  { %v824_v50 = vpop.permute.xlu0 %823 }
 0x1a2   :  { %2759 = vmatmul.mubr.msk.f32.gmra.mxu0 %vm305_vm3, %v816_v54 }
 0x1a3   :  { %2761 = vmatprep.mubr.msk.f32.mxu0 %vm3073_vm0, %v3071_v0 }
 0x1a6   :  { %2762 = vmatmul.mubr.msk.f32.gmra.mxu0 %vm305_vm3, %v818_v55 }
 0x1a7   :  { %2764 = vmatprep.mubr.msk.f32.mxu0 %vm3073_vm0, %v3071_v0 }
 0x1aa   :  { %2765 = vmatmul.mubr.msk.f32.gmra.mxu0 %vm305_vm3, %v820_v56 }
 0x1ab   :  { %2767 = vmatprep.mubr.msk.f32.mxu0 %vm3073_vm0, %v3071_v0 }
 0x1ae   :  { %2768 = vmatmul.mubr.msk.f32.gmra.mxu0 %vm305_vm3, %v822_v49 }
 0x1af   :  { %2770 = vmatprep.mubr.msk.f32.mxu0 %vm3073_vm0, %v3071_v0 }
 0x1b2   :  { %2771 = vmatmul.mubr.msk.f32.gmra.mxu0 %vm305_vm3, %v824_v50 }
 0x1b3   :  { %2832 = vmatprep.mubr.msk.f32.mxu0 %vm3073_vm0, %v3071_v0 }
 0x1bb   :  { %v531_v51 = vpop.f32.mrf.mxu1 }
 0x1bd   :  { %v2705_v52 = vpop.f32.mrf.mxu1 }
 0x1c0   :  { %v536_v57 = vpop.f32.mrf.mxu1 }
 0x1c2   :  { %v2708_v58 = vpop.f32.mrf.mxu1 }
 0x1c4   :  { %v541_v59 = vpop.f32.mrf.mxu1 }
 0x1c6   :  { %v2711_v60 = vpop.f32.mrf.mxu1 }
 0x1c8   :  { %v621_v61 = vpop.f32.mrf.mxu1 }
 0x1c9   :  { %v622_v62 = vadd.f32 %v621_v61, %v531_v51 }
 0x1ca   :  { %v2726_v63 = vpop.f32.mrf.mxu1 }
 0x1cb   :  { %v641_v8 = vadd.f32 %v2483_v4, %v622_v62 }
 0x1cc   :  { %v626_v1 = vpop.f32.mrf.mxu1 }
 0x1cd   :  { %v627_v2 = vadd.f32 %v626_v1, %v536_v57 }
 0x1ce   :  { %v2729_v3 = vpop.f32.mrf.mxu1 }
 0x1cf   :  { %v642_v9 = vadd.f32 %v2483_v4, %v627_v2 }
 0x1d0   :  { %v631_v5 = vpop.f32.mrf.mxu1 }
 0x1d1   :  { %v632_v6 = vadd.f32 %v631_v5, %v541_v59 }
 0x1d2   :  { %v2732_v7 = vpop.f32.mrf.mxu1 }
 0x1d3   :  { %v643_v10 = vadd.f32 %v2483_v4, %v632_v6 }
 0x1d4   :  { %v714_v11 = vpop.f32.mrf.mxu1 }
 0x1d5   :  { %v3389_v12 = vadd.f32 %v714_v11, %v641_v8  ;;  %v3391_v13 = vadd.f32 %v714_v11, %v642_v9  ;;  %v3393_v14 = vadd.f32 %v714_v11, %v643_v10 }
 0x1d6   :  { %v2743_v15 = vpop.f32.mrf.mxu1 }
 0x252   :  { %v3399_v17 = vpop.f32.mrf.mxu0 }
 0x253   :  { %v953_v29 = vmul.f32 %v3399_v17, %v3399_v17 }
 0x254   :  { %v2748_v18 = vpop.f32.mrf.mxu0 }
 0x255   :  { %v962_v39 = vsel %vm305_vm3, %v953_v29, 0.0  ;;  %v1192_v40 = vsel %vm1191_vm6, %v953_v29, 0.0 }
 0x256   :  { %v3401_v19 = vpop.f32.mrf.mxu0 }
 0x257   :  { %v954_v41 = vmul.f32 %v3401_v19, %v3401_v19 }
 0x258   :  { %v2751_v20 = vpop.f32.mrf.mxu0 }
 0x259   :  { %v967_v56 = vsel %vm305_vm3, %v954_v41, 0.0  ;;  %v1197_v49 = vsel %vm1191_vm6, %v954_v41, 0.0 }
 0x25a   :  { %v3403_v21 = vpop.f32.mrf.mxu0 }
 0x25b   :  { %v955_v44 = vmul.f32 %v3403_v21, %v3403_v21 }
 0x25c   :  { %v2754_v22 = vpop.f32.mrf.mxu0 }
 0x25d   :  { %v972_v1 = vsel %vm305_vm3, %v955_v44, 0.0  ;;  %v1202_v2 = vsel %vm1191_vm6, %v955_v44, 0.0 }
 0x25e   :  { %v3405_v23 = vpop.f32.mrf.mxu0 }
 0x25f   :  { %v956_v27 = vmul.f32 %v3405_v23, %v3405_v23 }
 0x260   :  { %v2757_v24 = vpop.f32.mrf.mxu0 }
 0x261   :  { %v963_v32 = vsel %vm305_vm3, %v956_v27, 0.0  ;;  %v1193_v36 = vsel %vm1191_vm6, %v956_v27, 0.0 }
 0x262   :  { %v3407_v25 = vpop.f32.mrf.mxu0  ;;  %v964_v45 = vadd.f32 %v963_v32, %v962_v39  ;;  %v1194_v46 = vadd.f32 %v1193_v36, %v1192_v40  ;;  %v795_v39 = vld [vmem:[%s3461_s25 + $0x18] sm:$0xff] }
 0x263   :  { %v957_v30 = vmul.f32 %v3407_v25, %v3407_v25 }
 0x264   :  { %v2760_v26 = vpop.f32.mrf.mxu0 }
 0x265   :  { %v968_v47 = vsel %vm305_vm3, %v957_v30, 0.0  ;;  %v1198_v48 = vsel %vm1191_vm6, %v957_v30, 0.0 }
 0x266   :  { %v3411_v28 = vpop.f32.mrf.mxu0  ;;  %v969_v51 = vadd.f32 %v968_v47, %v967_v56  ;;  %v1199_v52 = vadd.f32 %v1198_v48, %v1197_v49 }
 0x267   :  { %v958_v38 = vmul.f32 %v3411_v28, %v3411_v28 }
 0x268   :  { %v2763_v31 = vpop.f32.mrf.mxu0 }
 0x269   :  { %v973_v60 = vsel %vm305_vm3, %v958_v38, 0.0  ;;  %v1203_v61 = vsel %vm1191_vm6, %v958_v38, 0.0 }
 0x26a   :  { %v3419_v37 = vpop.f32.mrf.mxu0  ;;  %v974_v7 = vadd.f32 %v973_v60, %v972_v1  ;;  %v1204_v8 = vadd.f32 %v1203_v61, %v1202_v2 }
 0x26b   :  { %v959_v42 = vmul.f32 %v3419_v37, %v3419_v37 }
 0x26c   :  { %v2766_v34 = vpop.f32.mrf.mxu0 }
 0x26d   :  { %v965_v35 = vsel %vm305_vm3, %v959_v42, 0.0  ;;  %v1195_v43 = vsel %vm1191_vm6, %v959_v42, 0.0 }
 0x26e   :  { %v966_v53 = vadd.f32 %v965_v35, %v964_v45  ;;  %v1196_v54 = vadd.f32 %v1195_v43, %v1194_v46  ;;  %v3435_v55 = vpop.f32.mrf.mxu0  ;;  %v794_v46 = vld [vmem:[%s3461_s25 + $0x10] sm:$0xff] }
 0x26f   :  { %v960_v50 = vmul.f32 %v3435_v55, %v3435_v55 }
 0x270   :  { %v977_v57 = vmax.f32 %v966_v53, 1e-08  ;;  %v1207_v58 = vmax.f32 %v1196_v54, 1e-08  ;;  %v2769_v59 = vpop.f32.mrf.mxu0  ;;  %v793_v54 = vld [vmem:[%s3461_s25 + $0x8] sm:$0xff] }
 0x271   :  { %v970_v62 = vsel %vm305_vm3, %v960_v50, 0.0  ;;  %v1200_v63 = vsel %vm1191_vm6, %v960_v50, 0.0  ;;  %v792_v59 = vld [vmem:[%s3461_s25] sm:$0xff]  ;;  %s3097_s25 = smov 21  }
 0x272   :  { %3016 = vrsqrt.f32 %v977_v57  ;;  %v3447_v3 = vpop.f32.mrf.mxu0  ;;  %v971_v4 = vadd.f32 %v970_v62, %v969_v51  ;;  %v1201_v5 = vadd.f32 %v1200_v63, %v1199_v52  ;;  %vm982_vm7 = vcmp.eq.f32.partialorder %v977_v57, inf  ;;  %s2452_s28 = sld [smem:[%s3834_s0 + %s3097_s25]]  }
 0x273   :  { %3018 = vrsqrt.f32 %v1207_v58  ;;  %v961_v6 = vmul.f32 %v3447_v3, %v3447_v3  ;;  %v985_v31 = vand.u32 2147483648, %v977_v57  ;;  %vm1212_vm8 = vcmp.eq.f32.partialorder %v1207_v58, inf }
 0x274   :  { %v2772_v9 = vpop.f32.mrf.mxu0  ;;  %v978_v10 = vmax.f32 %v971_v4, 1e-08  ;;  %v1208_v11 = vmax.f32 %v1201_v5, 1e-08  ;;  %v1215_v32 = vand.u32 2147483648, %v1207_v58  ;;  %vm984_vm9 = vcmp.eq.f32.partialorder %v977_v57, 0.0 }
 0x275   :  { %v975_v15 = vsel %vm305_vm3, %v961_v6, 0.0  ;;  %v1205_v16 = vsel %vm1191_vm6, %v961_v6, 0.0  ;;  %vm1214_vm10 = vcmp.eq.f32.partialorder %v1207_v58, 0.0  ;;  %v721_v5 = vmax.f32 %v3389_v12, 0.0  ;;  %v1258_v6 = vld [vmem:[%s3474_s29] sm:$0xff]  ;;  %s3098_s29 = smov 23  }
 0x276   :  { %v976_v18 = vadd.f32 %v975_v15, %v974_v7  ;;  %v1206_v20 = vadd.f32 %v1205_v16, %v1204_v8  ;;  %3020 = vrsqrt.f32 %v978_v10  ;;  %vm1219_vm11 = vcmp.eq.f32.partialorder %v1208_v11, inf  ;;  %s2454_s2 = sld [smem:[%s3834_s0 + %s3098_s29]]  }
 0x277   :  { %3022 = vrsqrt.f32 %v1208_v11  ;;  %vm1221_vm12 = vcmp.eq.f32.partialorder %v1208_v11, 0.0  ;;  %vm989_vm13 = vcmp.eq.f32.partialorder %v978_v10, inf  ;;  %v992_v35 = vand.u32 2147483648, %v978_v10 }
 0x278   :  { %v3453_v22 = vmax.f32 %v976_v18, 1e-08  ;;  %v3455_v24 = vmax.f32 %v1206_v20, 1e-08  ;;  %v1222_v44 = vand.u32 2147483648, %v1208_v11  ;;  %vm991_vm14 = vcmp.eq.f32.partialorder %v978_v10, 0.0 }
 0x279   :  { %v722_v7 = vmax.f32 %v3391_v13, 0.0  ;;  %v723_v12 = vmax.f32 %v3393_v14, 0.0 }
 0x27a   :  { %3024 = vrsqrt.f32 %v3453_v22  ;;  %vm1226_vm15 = vcmp.eq.f32.partialorder %v3455_v24, inf  ;;  %vm996_vm1 = vcmp.eq.f32.partialorder %v3453_v22, inf  ;;  %v1229_v61 = vand.u32 2147483648, %v3455_v24 }
 0x27b   :  { %3026 = vrsqrt.f32 %v3455_v24  ;;  %vm998_vm2 = vcmp.eq.f32.partialorder %v3453_v22, 0.0  ;;  %vm1228_vm6 = vcmp.eq.f32.partialorder %v3455_v24, 0.0 }
 0x27f   :  { %v3017_v26 = vpop.eup %3016 }
 0x280   :  { %v3019_v27 = vpop.eup %3018  ;;  %v981_v29 = vmul.f32 %v3017_v26, %v977_v57 }
 0x281   :  { %v1211_v30 = vmul.f32 %v3019_v27, %v1207_v58 }
 0x282   :  { %v983_v36 = vsel %vm982_vm7, %v977_v57, %v981_v29 }
 0x283   :  { %v1213_v40 = vsel %vm1212_vm8, %v1207_v58, %v1211_v30  ;;  %v986_v41 = vsel %vm984_vm9, %v985_v31, %v983_v36  ;;  %v3021_v42 = vpop.eup %3020  ;;  %v999_v58 = vand.u32 2147483648, %v3453_v22 }
 0x284   :  { %v1216_v45 = vsel %vm1214_vm10, %v1215_v32, %v1213_v40  ;;  %2776 = vmatmul.mubr.msk.f32.vlgmr.msra.gmra.mxu1 %vm305_vm3, %v986_v41  ;;  %v3023_v47 = vpop.eup %3022  ;;  %v988_v48 = vmul.f32 %v3021_v42, %v978_v10 }
 0x285   :  { %v2504_v34 = vmul.f32 -1.442695, %v1216_v45  ;;  %2778 = vmatprep.mubr.msk.f32.mxu1 %vm3073_vm0, %v3071_v0  ;;  %2785 = vmatpush3.msra.mxu1 %v795_v39  ;;  %v1218_v38 = vmul.f32 %v3023_v47, %v1208_v11 }
 0x286   :  { %2786 = vmatprep.subr.mxu1 %v3071_v0  ;;  %v990_v53 = vsel %vm989_vm13, %v978_v10, %v988_v48 }
 0x287   :  { %v3025_v43 = vpop.eup %3024  ;;  %3028 = vpow2.f32 %v2504_v34  ;;  %2787 = vmatpush3.msra.mxu1 %v794_v46  ;;  %v1220_v49 = vsel %vm1219_vm11, %v1208_v11, %v1218_v38  ;;  %v993_v50 = vsel %vm991_vm14, %v992_v35, %v990_v53  ;;  %vm1863_vm14 = vcmask 130048  }
 0x288   :  { %v3027_v56 = vpop.eup %3026  ;;  %v995_v51 = vmul.f32 %v3025_v43, %v3453_v22  ;;  %2788 = vmatprep.subr.mxu1 %v3071_v0  ;;  %v1223_v52 = vsel %vm1221_vm12, %v1222_v44, %v1220_v49  ;;  %2779 = vmatmul.mubr.msk.f32.gmra.mxu1 %vm305_vm3, %v993_v50 }
 0x289   :  { %v1225_v57 = vmul.f32 %v3027_v56, %v3455_v24  ;;  %v2505_v60 = vmul.f32 -1.442695, %v1223_v52  ;;  %2781 = vmatprep.mubr.msk.f32.mxu1 %vm3073_vm0, %v3071_v0  ;;  %2789 = vmatpush3.msra.mxu1 %v793_v54 }
 0x28a   :  { %v997_v62 = vsel %vm996_vm1, %v3453_v22, %v995_v51  ;;  %2790 = vmatprep.subr.mxu1 %v3071_v0  ;;  %v1263_v51 = vld [vmem:[%s2448_s8] sm:$0xff]  ;;  %s2460_s8 = sld [smem:[%s3834_s0 + %s3110_s5]]  }
 0x28b   :  { %v1227_v63 = vsel %vm1226_vm15, %v3455_v24, %v1225_v57  ;;  %v1000_v1 = vsel %vm998_vm2, %v999_v58, %v997_v62  ;;  %3030 = vpow2.f32 %v2505_v60  ;;  %2791 = vmatpush3.msra.mxu1 %v792_v59  ;;  %2831 = vmatpush3.msra.mxu0 %v1263_v51  ;;  %vm2031_vm15 = vcmask 261248  }
 0x28c   :  { %v1230_v2 = vsel %vm1228_vm6, %v1229_v61, %v1227_v63  ;;  %2782 = vmatmul.mubr.msk.f32.gmra.mxu1 %vm305_vm3, %v1000_v1  ;;  %2801 = vmatprep.subr.mxu1 %v3071_v0 }
 0x28d   :  { %v2506_v4 = vmul.f32 -1.442695, %v1230_v2  ;;  %2792 = vmatprep.mubr.msk.f32.mxu1 %vm3073_vm0, %v3071_v0  ;;  %2841 = vmatprep.subr.mxu0 %v3071_v0 }
 0x28f   :  { %3032 = vpow2.f32 %v2506_v4 }
 0x290   :  { %2793 = vmatmul.mubr.msk.f32.vlgmr.msra.gmra.mxu1 %vm644_vm4, %v721_v5 }
 0x291   :  { %2795 = vmatprep.mubr.msk.f32.mxu1 %vm3073_vm0, %v3071_v0  ;;  %2802 = vmatpush3.msra.mxu1 %v1258_v6 }
 0x292   :  { %2869 = vmatprep.subr.mxu1 %v3071_v0 }
 0x294   :  { %v3029_v8 = vpop.eup %3028  ;;  %2796 = vmatmul.mubr.msk.f32.gmra.mxu1 %vm644_vm4, %v722_v7 }
 0x295   :  { %v1240_v9 = vadd.f32 1.0, %v3029_v8  ;;  %2798 = vmatprep.mubr.msk.f32.mxu1 %vm3073_vm0, %v3071_v0 }
 0x297   :  { %3034 = vrcp.f32 %v1240_v9 }
 0x298   :  { %v3031_v10 = vpop.eup %3030  ;;  %2799 = vmatmul.mubr.msk.f32.gmra.mxu1 %vm644_vm4, %v723_v12 }
 0x299   :  { %v1241_v11 = vadd.f32 1.0, %v3031_v10  ;;  %2803 = vmatprep.mubr.msk.f32.mxu1 %vm3073_vm0, %v3071_v0 }
 0x29b   :  { %3036 = vrcp.f32 %v1241_v11 }
 0x29c   :  { %v3033_v13 = vpop.eup %3032 }
 0x29d   :  { %v1242_v15 = vadd.f32 1.0, %v3033_v13 }
 0x29f   :  { %3038 = vrcp.f32 %v1242_v15 }
 0x2a4   :  { %v3035_v16 = vpop.eup %3034 }
 0x2a5   :  { %v1249_v18 = vmul.f32 %v3035_v16, %v3399_v17  ;;  %v1252_v26 = vmul.f32 %v3035_v16, %v3405_v23  ;;  %v3089_v23 = vmov 0  }
 0x2a6   :  { %2988 = vset.pattern.permute.xlu0 %v3089_v23 }
 0x2a7   :  { %1274 = vrot.lane.b32.xlu1 %v1249_v18, %s3087_s30 }
 0x2a8   :  { %v3037_v20 = vpop.eup %3036 }
 0x2a9   :  { %v1250_v14 = vmul.f32 %v3037_v20, %v3401_v19  ;;  %v1253_v27 = vmul.f32 %v3037_v20, %v3407_v25  ;;  %v1255_v19 = vmul.f32 %v3035_v16, %v3419_v37  ;;  %v1256_v29 = vmul.f32 %v3037_v20, %v3435_v55 }
 0x2aa   :  { %v3090_v25 = vmov 1   ;;  %v3091_v37 = vmov 2  }
 0x2ab   :  { %1276 = vrot.lane.b32.xlu0 %v1250_v14, %s3087_s30  ;;  %2989 = vset.pattern.permute.xlu1 %v3090_v25 }
 0x2ac   :  { %v3039_v22 = vpop.eup %3038 }
 0x2ad   :  { %v1251_v24 = vmul.f32 %v3039_v22, %v3403_v21  ;;  %v1254_v17 = vmul.f32 %v3039_v22, %v3411_v28  ;;  %v1257_v21 = vmul.f32 %v3039_v22, %v3447_v3  ;;  %v1655_v28 = vld [vmem:[%s2433_s4] sm:$0xff]  ;;  %s3109_s4 = smov 48  }
 0x2af   :  { %1278 = vrot.lane.b32.xlu1 %v1251_v24, %s3087_s30  ;;  %1280 = vrot.lane.b32.xlu0 %v1252_v26, %s3087_s30 }
 0x2b3   :  { %1282 = vrot.lane.b32.xlu1 %v1253_v27, %s3087_s30  ;;  %1284 = vrot.lane.b32.xlu0 %v1254_v17, %s3087_s30 }
 0x2b7   :  { %1286 = vrot.lane.b32.xlu1 %v1255_v19, %s3087_s30  ;;  %1288 = vrot.lane.b32.xlu0 %v1256_v29, %s3087_s30 }
 0x2bb   :  { %1290 = vrot.lane.b32.xlu1 %v1257_v21, %s3087_s30  ;;  %1658 = vperm.xlu0 %2988, %v1655_v28  }
 0x2bf   :  { %1666 = vperm.xlu1 %2989, %v1655_v28   ;;  %2991 = vset.pattern.permute.xlu0 %v3091_v37 }
 0x2c3   :  { %2990 = vset.pattern.permute.xlu1 %v3091_v37 }
 0x2c4   :  { %1678 = vperm.xlu1 %2990, %v1655_v28  }
 0x319   :  { %v1275_v55 = vpop.permute.xlu1 %1274 }
 0x31a   :  { %2804 = vmatmul.mubr.msk.f32.vlgmr.msra.gmra.mxu1 %vm305_vm3, %v1275_v55 }
 0x31b   :  { %2806 = vmatprep.mubr.msk.f32.mxu1 %vm3073_vm0, %v3071_v0 }
 0x31d   :  { %v1277_v3 = vpop.permute.xlu0 %1276 }
 0x31e   :  { %2807 = vmatmul.mubr.msk.f32.gmra.mxu1 %vm305_vm3, %v1277_v3 }
 0x31f   :  { %2809 = vmatprep.mubr.msk.f32.mxu1 %vm3073_vm0, %v3071_v0 }
 0x321   :  { %v1279_v30 = vpop.permute.xlu1 %1278  ;;  %v1281_v31 = vpop.permute.xlu0 %1280 }
 0x322   :  { %2810 = vmatmul.mubr.msk.f32.gmra.mxu1 %vm305_vm3, %v1279_v30 }
 0x323   :  { %2812 = vmatprep.mubr.msk.f32.mxu1 %vm3073_vm0, %v3071_v0 }
 0x325   :  { %v1283_v32 = vpop.permute.xlu1 %1282  ;;  %v1285_v36 = vpop.permute.xlu0 %1284 }
 0x326   :  { %2813 = vmatmul.mubr.msk.f32.gmra.mxu1 %vm305_vm3, %v1281_v31 }
 0x327   :  { %2815 = vmatprep.mubr.msk.f32.mxu1 %vm3073_vm0, %v3071_v0 }
 0x329   :  { %v1287_v39 = vpop.permute.xlu1 %1286  ;;  %v1289_v40 = vpop.permute.xlu0 %1288 }
 0x32a   :  { %2816 = vmatmul.mubr.msk.f32.gmra.mxu1 %vm305_vm3, %v1283_v32 }
 0x32b   :  { %2818 = vmatprep.mubr.msk.f32.mxu1 %vm3073_vm0, %v3071_v0 }
 0x32d   :  { %v1291_v41 = vpop.permute.xlu1 %1290 }
 0x32e   :  { %2819 = vmatmul.mubr.msk.f32.gmra.mxu1 %vm305_vm3, %v1285_v36 }
 0x32f   :  { %2821 = vmatprep.mubr.msk.f32.mxu1 %vm3073_vm0, %v3071_v0 }
 0x332   :  { %2822 = vmatmul.mubr.msk.f32.gmra.mxu1 %vm305_vm3, %v1287_v39 }
 0x333   :  { %2824 = vmatprep.mubr.msk.f32.mxu1 %vm3073_vm0, %v3071_v0 }
 0x336   :  { %2825 = vmatmul.mubr.msk.f32.gmra.mxu1 %vm305_vm3, %v1289_v40  ;;  %v3574_v59 = vpop.permute.xlu0 %1658 }
 0x337   :  { %2827 = vmatprep.mubr.msk.f32.mxu1 %vm3073_vm0, %v3071_v0 }
 0x33a   :  { %2828 = vmatmul.mubr.msk.f32.gmra.mxu1 %vm305_vm3, %v1291_v41  ;;  %v3572_v57 = vpop.permute.xlu1 %1666 }
 0x33b   :  { %2873 = vmatprep.mubr.msk.f32.mxu1 %vm3073_vm0, %v3071_v0 }
 0x33f   :  { %v3577_v63 = vpop.permute.xlu1 %1678 }
 0x344   :  { %v1076_v42 = vpop.f32.mrf.mxu1 }
 0x346   :  { %v2777_v45 = vpop.f32.mrf.mxu1 }
 0x348   :  { %v1081_v46 = vpop.f32.mrf.mxu1 }
 0x34a   :  { %v2780_v47 = vpop.f32.mrf.mxu1 }
 0x34c   :  { %v1086_v34 = vpop.f32.mrf.mxu1 }
 0x34e   :  { %v2783_v48 = vpop.f32.mrf.mxu1 }
 0x350   :  { %v1165_v38 = vpop.f32.mrf.mxu1 }
 0x351   :  { %v3562_v35 = vadd.f32 %v1165_v38, %v1076_v42 }
 0x352   :  { %v2794_v43 = vpop.f32.mrf.mxu1 }
 0x354   :  { %v1170_v44 = vpop.f32.mrf.mxu1 }
 0x355   :  { %v3564_v53 = vadd.f32 %v1170_v44, %v1081_v46 }
 0x356   :  { %v2797_v54 = vpop.f32.mrf.mxu1 }
 0x358   :  { %v1175_v56 = vpop.f32.mrf.mxu1 }
 0x359   :  { %v3566_v49 = vadd.f32 %v1175_v56, %v1086_v34 }
 0x35a   :  { %v2800_v50 = vpop.f32.mrf.mxu1 }
 0x3da   :  { %v1376_v52 = vpop.f32.mrf.mxu1 }
 0x3db   :  { %v1662_v1 = vmul.f32 %v3574_v59, %v1376_v52  ;;  %v1420_v18 = vmul.f32 %v1376_v52, %v1376_v52 }
 0x3dc   :  { %v2805_v58 = vpop.f32.mrf.mxu1 }
 0x3dd   :  { %v1429_v19 = vsel %vm305_vm3, %v1420_v18, 0.0 }
 0x3de   :  { %v1381_v60 = vpop.f32.mrf.mxu1 }
 0x3df   :  { %v1671_v61 = vmul.f32 %v3572_v57, %v1381_v60  ;;  %v1421_v29 = vmul.f32 %v1381_v60, %v1381_v60 }
 0x3e0   :  { %v2808_v62 = vpop.f32.mrf.mxu1 }
 0x3e1   :  { %v1674_v4 = vadd.f32 %v1671_v61, %v1662_v1  ;;  %v1434_v31 = vsel %vm305_vm3, %v1421_v29, 0.0 }
 0x3e2   :  { %v1386_v2 = vpop.f32.mrf.mxu1 }
 0x3e3   :  { %v1683_v5 = vmul.f32 %v3577_v63, %v1386_v2  ;;  %v1422_v32 = vmul.f32 %v1386_v2, %v1386_v2 }
 0x3e4   :  { %v2811_v6 = vpop.f32.mrf.mxu1 }
 0x3e5   :  { %v1686_v7 = vadd.f32 %v1683_v5, %v1674_v4  ;;  %v1439_v38 = vsel %vm305_vm3, %v1422_v32, 0.0  ;;  %v1262_v5 = vld [vmem:[%s2447_s12 + $0x18] sm:$0xff] }
 0x3e6   :  { %v1391_v8 = vpop.f32.mrf.mxu1 }
 0x3e7   :  { %1693 = vrot.lane.b32.xlu0 %v1686_v7, %s3087_s30  ;;  %v1423_v13 = vmul.f32 %v1391_v8, %v1391_v8  ;;  %v1663_v15 = vmul.f32 %v3574_v59, %v1391_v8 }
 0x3e8   :  { %v2814_v9 = vpop.f32.mrf.mxu1 }
 0x3e9   :  { %v1430_v24 = vsel %vm305_vm3, %v1423_v13, 0.0  ;;  %v1261_v9 = vld [vmem:[%s2447_s12 + $0x10] sm:$0xff] }
 0x3ea   :  { %v1396_v12 = vpop.f32.mrf.mxu1  ;;  %v1431_v23 = vadd.f32 %v1430_v24, %v1429_v19 }
 0x3eb   :  { %v1672_v10 = vmul.f32 %v3572_v57, %v1396_v12  ;;  %v1424_v26 = vmul.f32 %v1396_v12, %v1396_v12 }
 0x3ec   :  { %v2817_v11 = vpop.f32.mrf.mxu1 }
 0x3ed   :  { %v1675_v20 = vadd.f32 %v1672_v10, %v1663_v15  ;;  %v1435_v28 = vsel %vm305_vm3, %v1424_v26, 0.0  ;;  %v1260_v11 = vld [vmem:[%s2447_s12 + $0x8] sm:$0xff]  ;;  %v2503_v15 = vld [vmem:[%s2445_s16] ss:$0 sm:$0xff]  ;;  %s3103_s16 = smov 24  }
 0x3ee   :  { %v1401_v16 = vpop.f32.mrf.mxu1  ;;  %v1436_v40 = vadd.f32 %v1435_v28, %v1434_v31  ;;  %v1187_v19 = vadd.f32 %v2503_v15, %v3566_v49  ;;  %v3069_v28 = vld [vmem:[%s3151_s18] sm:$0xff]  ;;  %v3070_v31 = vld [vmem:[%s3151_s18 + $0x10] sm:$0xff]  ;;  %s3752_s19 = sld [smem:[%s3834_s0 + %s3103_s16]]  }
 0x3ef   :  { %v1684_v14 = vmul.f32 %v3577_v63, %v1401_v16  ;;  %v1425_v37 = vmul.f32 %v1401_v16, %v1401_v16  ;;  %s2462_s16 = sld [smem:[%s3834_s0 + %s3112_s13]]  }
 0x3f0   :  { %v2820_v22 = vpop.f32.mrf.mxu1  ;;  %v1190_v29 = vmax.f32 %v1187_v19, 0.0 }
 0x3f1   :  { %v1687_v27 = vadd.f32 %v1684_v14, %v1675_v20  ;;  %v1440_v45 = vsel %vm305_vm3, %v1425_v37, 0.0  ;;  %v1259_v20 = vld [vmem:[%s2447_s12] sm:$0xff]  ;;  %v1185_v22 = vadd.f32 %v2503_v15, %v3562_v35  ;;  %s2461_s12 = sld [smem:[%s3834_s0 + %s3111_s9]]  }
 0x3f2   :  { %v1406_v17 = vpop.f32.mrf.mxu1  ;;  %v1441_v56 = vadd.f32 %v1440_v45, %v1439_v38 }
 0x3f3   :  { %v1426_v21 = vmul.f32 %v1406_v17, %v1406_v17  ;;  %1695 = vrot.lane.b32.xlu1 %v1687_v27, %s3087_s30  ;;  %v1664_v46 = vmul.f32 %v3574_v59, %v1406_v17  ;;  %v1188_v27 = vmax.f32 %v1185_v22, 0.0  ;;  %v1186_v17 = vadd.f32 %v2503_v15, %v3564_v53 }
 0x3f4   :  { %v2823_v25 = vpop.f32.mrf.mxu1 }
 0x3f5   :  { %v1432_v55 = vsel %vm305_vm3, %v1426_v21, 0.0  ;;  %v1189_v35 = vmax.f32 %v1186_v17, 0.0 }
 0x3f6   :  { %v1433_v3 = vadd.f32 %v1432_v55, %v1431_v23  ;;  %v1411_v30 = vpop.f32.mrf.mxu1  ;;  %v3068_v23 = vld [vmem:[%s3151_s18 + $0x8] sm:$0xff]  ;;  %s3095_s18 = smov 19  }
 0x3f7   :  { %v1427_v36 = vmul.f32 %v1411_v30, %v1411_v30  ;;  %v1673_v39 = vmul.f32 %v3572_v57, %v1411_v30  ;;  %s2450_s20 = sld [smem:[%s3834_s0 + %s3095_s18]]  }
 0x3f8   :  { %v1444_v41 = vmax.f32 %v1433_v3, 1e-08  ;;  %v2826_v42 = vpop.f32.mrf.mxu1 }
 0x3f9   :  { %v1437_v47 = vsel %vm305_vm3, %v1427_v36, 0.0  ;;  %v1676_v43 = vadd.f32 %v1673_v39, %v1664_v46 }
 0x3fa   :  { %3040 = vrsqrt.f32 %v1444_v41  ;;  %v1438_v34 = vadd.f32 %v1437_v47, %v1436_v40  ;;  %v1416_v48 = vpop.f32.mrf.mxu1  ;;  %vm1449_vm7 = vcmp.eq.f32.partialorder %v1444_v41, inf  ;;  %v1452_v2 = vand.u32 2147483648, %v1444_v41 }
 0x3fb   :  { %v1428_v44 = vmul.f32 %v1416_v48, %v1416_v48  ;;  %v1685_v54 = vmul.f32 %v3577_v63, %v1416_v48  ;;  %vm1451_vm8 = vcmp.eq.f32.partialorder %v1444_v41, 0.0 }
 0x3fc   :  { %v1445_v50 = vmax.f32 %v1438_v34, 1e-08  ;;  %v2829_v51 = vpop.f32.mrf.mxu1 }
 0x3fd   :  { %v1442_v52 = vsel %vm305_vm3, %v1428_v44, 0.0  ;;  %v1688_v58 = vadd.f32 %v1685_v54, %v1676_v43  ;;  %v1763_v38 = vld [vmem:[%s2450_s20] sm:$0xff]  ;;  %s3104_s20 = smov 22  }
 0x3fe   :  { %3042 = vrsqrt.f32 %v1445_v50  ;;  %v1443_v60 = vadd.f32 %v1442_v52, %v1441_v56  ;;  %vm1456_vm9 = vcmp.eq.f32.partialorder %v1445_v50, inf  ;;  %v1459_v12 = vand.u32 2147483648, %v1445_v50  ;;  %s2453_s23 = sld [smem:[%s3834_s0 + %s3104_s20]]  }
 0x3ff   :  { %1697 = vrot.lane.b32.xlu0 %v1688_v58, %s3087_s30  ;;  %vm1458_vm10 = vcmp.eq.f32.partialorder %v1445_v50, 0.0 }
 0x400   :  { %v1446_v61 = vmax.f32 %v1443_v60, 1e-08 }
 0x402   :  { %3044 = vrsqrt.f32 %v1446_v61  ;;  %vm1463_vm11 = vcmp.eq.f32.partialorder %v1446_v61, inf  ;;  %v1466_v14 = vand.u32 2147483648, %v1446_v61  ;;  %vm1465_vm12 = vcmp.eq.f32.partialorder %v1446_v61, 0.0 }
 0x407   :  { %v3041_v62 = vpop.eup %3040 }
 0x408   :  { %v1448_v1 = vmul.f32 %v3041_v62, %v1444_v41 }
 0x40a   :  { %v1450_v4 = vsel %vm1449_vm7, %v1444_v41, %v1448_v1 }
 0x40b   :  { %v3043_v6 = vpop.eup %3042  ;;  %v1453_v7 = vsel %vm1451_vm8, %v1452_v2, %v1450_v4 }
 0x40c   :  { %2833 = vmatmul.mubr.msk.f32.vlgmr.msra.gmra.mxu0 %vm305_vm3, %v1453_v7  ;;  %v1455_v8 = vmul.f32 %v3043_v6, %v1445_v50 }
 0x40d   :  { %2835 = vmatprep.mubr.msk.f32.mxu0 %vm3073_vm0, %v3071_v0  ;;  %2842 = vmatpush3.msra.mxu0 %v1262_v5 }
 0x40e   :  { %v1457_v10 = vsel %vm1456_vm9, %v1445_v50, %v1455_v8  ;;  %2843 = vmatprep.subr.mxu0 %v3071_v0 }
 0x40f   :  { %v3045_v13 = vpop.eup %3044  ;;  %v1460_v16 = vsel %vm1458_vm10, %v1459_v12, %v1457_v10  ;;  %2844 = vmatpush3.msra.mxu0 %v1261_v9  ;;  %vm2425_vm10 = vcmask 457728  }
 0x410   :  { %2836 = vmatmul.mubr.msk.f32.gmra.mxu0 %vm305_vm3, %v1460_v16  ;;  %v1462_v18 = vmul.f32 %v3045_v13, %v1446_v61  ;;  %2845 = vmatprep.subr.mxu0 %v3071_v0 }
 0x411   :  { %2838 = vmatprep.mubr.msk.f32.mxu0 %vm3073_vm0, %v3071_v0  ;;  %2846 = vmatpush3.msra.mxu0 %v1260_v11 }
 0x412   :  { %v1464_v24 = vsel %vm1463_vm11, %v1446_v61, %v1462_v18  ;;  %2847 = vmatprep.subr.mxu0 %v3071_v0  ;;  %v2522_v61 = vld [vmem:[%s2449_s24] ss:$0 sm:$0xff]  ;;  %s3105_s24 = smov 25  }
 0x413   :  { %v1467_v26 = vsel %vm1465_vm12, %v1466_v14, %v1464_v24  ;;  %2848 = vmatpush3.msra.mxu0 %v1259_v20  ;;  %s2456_s27 = sld [smem:[%s3834_s0 + %s3105_s24]]  }
 0x414   :  { %2839 = vmatmul.mubr.msk.f32.gmra.mxu0 %vm305_vm3, %v1467_v26  ;;  %2858 = vmatprep.subr.mxu0 %v3071_v0 }
 0x415   :  { %2849 = vmatprep.mubr.msk.f32.mxu0 %vm3073_vm0, %v3071_v0 }
 0x418   :  { %2850 = vmatmul.mubr.msk.f32.vlgmr.msra.gmra.mxu0 %vm644_vm4, %v1188_v27 }
 0x419   :  { %2852 = vmatprep.mubr.msk.f32.mxu0 %vm3073_vm0, %v3071_v0  ;;  %2859 = vmatpush3.msra.mxu0 %v1763_v38 }
 0x41a   :  { %2887 = vmatprep.subr.mxu0 %v3071_v0 }
 0x41c   :  { %2853 = vmatmul.mubr.msk.f32.gmra.mxu0 %vm644_vm4, %v1189_v35 }
 0x41d   :  { %2855 = vmatprep.mubr.msk.f32.mxu0 %vm3073_vm0, %v3071_v0 }
 0x420   :  { %2856 = vmatmul.mubr.msk.f32.gmra.mxu0 %vm644_vm4, %v1190_v29 }
 0x421   :  { %2860 = vmatprep.mubr.msk.f32.mxu0 %vm3073_vm0, %v3071_v0 }
 0x459   :  { %v1694_v21 = vpop.permute.xlu0 %1693 }
 0x45a   :  { %v3634_v37 = vadd.f32 %v3069_v28, %v1694_v21  ;;  %v2055_v28 = vld [vmem:[%s2454_s2 + $0x8] sm:$0xff] }
 0x45c   :  { %v1705_v55 = vmul.f32 %v3634_v37, %v3634_v37 }
 0x45e   :  { %v1708_v36 = vsel %vm305_vm3, %v1705_v55, 0.0 }
 0x465   :  { %v1696_v53 = vpop.permute.xlu1 %1695 }
 0x466   :  { %v3631_v25 = vadd.f32 %v3068_v23, %v1696_v53  ;;  %v1769_v23 = vld [vmem:[%s2452_s28 + $0x8] sm:$0xff] }
 0x467   :  { %2870 = vmatpush3.msra.mxu1 %v1769_v23  ;;  %v2068_v23 = vld [vmem:[%s3752_s19 + $0x60] sm:$0xff] }
 0x468   :  { %v1706_v49 = vmul.f32 %v3631_v25, %v3631_v25  ;;  %2871 = vmatprep.subr.mxu1 %v3071_v0 }
 0x46a   :  { %v1709_v30 = vsel %vm305_vm3, %v1706_v49, 0.0 }
 0x46b   :  { %v1710_v40 = vadd.f32 %v1709_v30, %v1708_v36 }
 0x471   :  { %v1698_v3 = vpop.permute.xlu0 %1697 }
 0x472   :  { %v3642_v32 = vadd.f32 %v3070_v31, %v1698_v3 }
 0x474   :  { %v1707_v39 = vmul.f32 %v3642_v32, %v3642_v32 }
 0x476   :  { %v1711_v41 = vsel %vm305_vm3, %v1707_v39, 0.0 }
 0x477   :  { %v1712_v42 = vadd.f32 %v1711_v41, %v1710_v40 }
 0x479   :  { %v1713_v45 = vmax.f32 %v1712_v42, 1e-08 }
 0x47b   :  { %vm1714_vm13 = vcmp.gt.f32.partialorder %v1713_v45, 2e-08 }
 0x47c   :  { %v2523_v46 = vsel %vm1714_vm13, 1.0, %v3071_v0 }
 0x47d   :  { %v1721_v47 = vsel %vm305_vm3, %v2523_v46, 0.0  ;;  %v1717_v34 = vmul.f32 %v2523_v46, %v1713_v45 }
 0x47e   :  { %1722 = vadd.xlane.f32.xlu1 %v1721_v47 }
 0x47f   :  { %v1718_v48 = vsel %vm305_vm3, %v1717_v34, 0.0 }
 0x480   :  { %1719 = vadd.xlane.f32.xlu0 %v1718_v48 }
 0x4cc   :  { %v1543_v43 = vpop.f32.mrf.mxu0 }
 0x4ce   :  { %v2834_v44 = vpop.f32.mrf.mxu0 }
 0x4d0   :  { %v1548_v54 = vpop.f32.mrf.mxu0 }
 0x4d2   :  { %v2837_v56 = vpop.f32.mrf.mxu0 }
 0x4d4   :  { %v1553_v50 = vpop.f32.mrf.mxu0 }
 0x4d6   :  { %v2840_v51 = vpop.f32.mrf.mxu0 }
 0x4d8   :  { %v1632_v52 = vpop.f32.mrf.mxu0 }
 0x4d9   :  { %v1633_v60 = vadd.f32 %v1632_v52, %v1543_v43 }
 0x4da   :  { %v2851_v58 = vpop.f32.mrf.mxu0 }
 0x4db   :  { %v1652_v4 = vadd.f32 %v2522_v61, %v1633_v60 }
 0x4dc   :  { %v1637_v62 = vpop.f32.mrf.mxu0 }
 0x4dd   :  { %v1638_v1 = vadd.f32 %v1637_v62, %v1548_v54  ;;  %v1661_v12 = vmul.f32 %v3574_v59, %v1652_v4 }
 0x4de   :  { %v2854_v2 = vpop.f32.mrf.mxu0 }
 0x4df   :  { %v1653_v5 = vadd.f32 %v2522_v61, %v1638_v1 }
 0x4e0   :  { %v1642_v6 = vpop.f32.mrf.mxu0 }
 0x4e1   :  { %v1669_v7 = vmul.f32 %v3572_v57, %v1653_v5  ;;  %v1643_v8 = vadd.f32 %v1642_v6, %v1553_v50  ;;  %v1767_v5 = vld [vmem:[%s3717_s6 + $0x18] sm:$0xff] }
 0x4e2   :  { %v2857_v9 = vpop.f32.mrf.mxu0 }
 0x4e3   :  { %v1654_v10 = vadd.f32 %v2522_v61, %v1643_v8  ;;  %v1670_v13 = vadd.f32 %v1669_v7, %v1661_v12  ;;  %v1766_v9 = vld [vmem:[%s3717_s6 + $0x10] sm:$0xff] }
 0x4e5   :  { %v1681_v11 = vmul.f32 %v3577_v63, %v1654_v10  ;;  %v1765_v10 = vld [vmem:[%s3717_s6 + $0x8] sm:$0xff] }
 0x4e7   :  { %v1682_v15 = vadd.f32 %v1681_v11, %v1670_v13  ;;  %v1764_v11 = vld [vmem:[%s3717_s6] sm:$0xff] }
 0x4e9   :  { %v1689_v16 = vadd.f32 %v1682_v15, %v3344_v33  ;;  %v2524_v15 = vld [vmem:[%s2458_s10] ss:$0 sm:$0xff] }
 0x4eb   :  { %v1733_v18 = vsel %vm644_vm4, %v1689_v16, 0.0 }
 0x4ec   :  { %1734 = vadd.xlane.f32.xlu0 %v1733_v18  ;;  %v2525_v18 = vld [vmem:[%s2459_s14] ss:$0 sm:$0xff] }
 0x507   :  { %v1723_v20 = vpop.xlane.xlu1 %1722 }
 0x508   :  { %v1724_v14 = vadd.f32 1e-08, %v1723_v20 }
 0x509   :  { %v1720_v24 = vpop.xlane.xlu0 %1719 }
 0x50a   :  { %3046 = vrcp.f32 %v1724_v14 }
 0x517   :  { %v3047_v22 = vpop.eup %3046 }
 0x518   :  { %v1726_v57 = vmul.f32 %v3047_v22, %v1720_v24 }
 0x51a   :  { %v1727_v26 = vadd.f32 1e-08, %v1726_v57 }
 0x51c   :  { %3048 = vrsqrt.f32 %v1727_v26 }
 0x529   :  { %v3049_v27 = vpop.eup %3048 }
 0x52a   :  { %v1729_v59 = vmul.f32 %v3049_v27, %v2523_v46 }
 0x52c   :  { %v3664_v17 = vmul.f32 %v1729_v59, %v3634_v37  ;;  %v3671_v33 = vmul.f32 %v1729_v59, %v3631_v25  ;;  %v3678_v63 = vmul.f32 %v1729_v59, %v3642_v32  ;;  %v1768_v25 = vld [vmem:[%s2452_s28] sm:$0xff]  ;;  %s3106_s28 = smov 26  }
 0x52d   :  { %2872 = vmatpush3.msra.mxu1 %v1768_v25  ;;  %v2054_v37 = vld [vmem:[%s2454_s2] sm:$0xff]  ;;  %v2067_v25 = vld [vmem:[%s3752_s19 + $0x58] sm:$0xff]  ;;  %s2457_s1 = sld [smem:[%s3834_s0 + %s3106_s28]]   ;;  %s3107_s2 = smov 32  }
 0x52e   :  { %2861 = vmatmul.mubr.msk.f32.vlgmr.msra.gmra.mxu0 %vm305_vm3, %v3664_v17  ;;  %2876 = vmatprep.subr.mxu1 %v3071_v0 }
 0x52f   :  { %2863 = vmatprep.mubr.msk.f32.mxu0 %vm3073_vm0, %v3071_v0  ;;  %2888 = vmatpush3.msra.mxu0 %v2055_v28 }
 0x530   :  { %2889 = vmatprep.subr.mxu0 %v3071_v0 }
 0x531   :  { %2890 = vmatpush3.msra.mxu0 %v2054_v37  ;;  %v2066_v37 = vld [vmem:[%s3752_s19 + $0x50] sm:$0xff] }
 0x532   :  { %2864 = vmatmul.mubr.msk.f32.gmra.mxu0 %vm305_vm3, %v3671_v33  ;;  %2907 = vmatprep.subr.mxu0 %v3071_v0 }
 0x533   :  { %2866 = vmatprep.mubr.msk.f32.mxu0 %vm3073_vm0, %v3071_v0 }
 0x536   :  { %2867 = vmatmul.mubr.msk.f32.gmra.mxu0 %vm305_vm3, %v3678_v63 }
 0x537   :  { %2891 = vmatprep.mubr.msk.f32.mxu0 %vm3073_vm0, %v3071_v0 }
 0x575   :  { %v1735_v35 = vpop.xlane.xlu0 %1734 }
 0x576   :  { %v1737_v19 = vmul.f32 0.03125, %v1735_v35  ;;  %v2071_v35 = vld [vmem:[%s3752_s19 + $0x78] sm:$0xff] }
 0x578   :  { %v3684_v29 = vsub.f32 %v1689_v16, %v1737_v19 }
 0x57a   :  { %v1739_v53 = vmul.f32 %v3684_v29, %v3684_v29 }
 0x57c   :  { %v1740_v21 = vsel %vm644_vm4, %v1739_v53, 0.0 }
 0x57d   :  { %1741 = vadd.xlane.f32.xlu1 %v1740_v21  ;;  %v2069_v21 = vld [vmem:[%s3752_s19 + $0x68] sm:$0xff] }
 0x5ee   :  { %v3699_v49 = vpop.f32.mrf.mxu0 }
 0x5ef   :  { %v1860_v30 = vmul.f32 %v3699_v49, %v3699_v49 }
 0x5f0   :  { %v2862_v55 = vpop.f32.mrf.mxu0 }
 0x5f1   :  { %v1864_v41 = vsel %vm1863_vm14, %v1860_v30, 0.0  ;;  %v2032_v42 = vsel %vm2031_vm15, %v1860_v30, 0.0  ;;  %v2064_v55 = vld [vmem:[%s3752_s19 + $0x40] sm:$0xff]  ;;  %v2062_v30 = vld [vmem:[%s3752_s19 + $0x30] sm:$0xff] }
 0x5f2   :  { %v3701_v3 = vpop.f32.mrf.mxu0 }
 0x5f3   :  { %v1861_v31 = vmul.f32 %v3701_v3, %v3701_v3 }
 0x5f4   :  { %v2865_v32 = vpop.f32.mrf.mxu0 }
 0x5f5   :  { %v1865_v36 = vsel %vm1863_vm14, %v1861_v31, 0.0  ;;  %v2033_v39 = vsel %vm2031_vm15, %v1861_v31, 0.0  ;;  %v2061_v31 = vld [vmem:[%s3752_s19 + $0x28] sm:$0xff]  ;;  %v2060_v32 = vld [vmem:[%s3752_s19 + $0x20] sm:$0xff] }
 0x5f6   :  { %v3708_v40 = vpop.f32.mrf.mxu0  ;;  %v1866_v46 = vadd.f32 %v1865_v36, %v1864_v41  ;;  %v2034_v47 = vadd.f32 %v2033_v39, %v2032_v42  ;;  %v2059_v36 = vld [vmem:[%s3752_s19 + $0x18] sm:$0xff]  ;;  %v2058_v39 = vld [vmem:[%s3752_s19 + $0x10] sm:$0xff]  ;;  %v2056_v41 = vld [vmem:[%s3752_s19] sm:$0xff] }
 0x5f7   :  { %v1862_v45 = vmul.f32 %v3708_v40, %v3708_v40 }
 0x5f8   :  { %v2868_v34 = vpop.f32.mrf.mxu0 }
 0x5f9   :  { %v1867_v48 = vsel %vm1863_vm14, %v1862_v45, 0.0  ;;  %v2035_v38 = vsel %vm2031_vm15, %v1862_v45, 0.0 }
 0x5fa   :  { %v1868_v43 = vadd.f32 %v1867_v48, %v1866_v46  ;;  %v2036_v44 = vadd.f32 %v2035_v38, %v2034_v47  ;;  %v2531_v46 = vld [vmem:[%s2453_s23] ss:$0 sm:$0xff] }
 0x5fc   :  { %v1869_v54 = vmax.f32 %v1868_v43, 1e-08  ;;  %v2037_v56 = vmax.f32 %v2036_v44, 1e-08  ;;  %v2073_v44 = vld [vmem:[%s2456_s27 + $0x8] sm:$0xff] }
 0x5fe   :  { %3050 = vrsqrt.f32 %v1869_v54  ;;  %vm1872_vm1 = vcmp.eq.f32.partialorder %v1869_v54, inf  ;;  %v1875_v1 = vand.u32 2147483648, %v1869_v54  ;;  %vm2040_vm2 = vcmp.eq.f32.partialorder %v2037_v56, inf }
 0x5ff   :  { %3052 = vrsqrt.f32 %v2037_v56  ;;  %v2043_v2 = vand.u32 2147483648, %v2037_v56  ;;  %vm1874_vm6 = vcmp.eq.f32.partialorder %v1869_v54, 0.0  ;;  %vm2042_vm7 = vcmp.eq.f32.partialorder %v2037_v56, 0.0 }
 0x606   :  { %v1742_v50 = vpop.xlane.xlu1 %1741 }
 0x607   :  { %v1743_v51 = vmul.f32 0.03125, %v1742_v50 }
 0x609   :  { %v1744_v52 = vadd.f32 1e-05, %v1743_v51 }
 0x60b   :  { %v3051_v58 = vpop.eup %3050  ;;  %3054 = vrsqrt.f32 %v1744_v52 }
 0x60c   :  { %v3053_v60 = vpop.eup %3052  ;;  %v1871_v61 = vmul.f32 %v3051_v58, %v1869_v54 }
 0x60d   :  { %v2039_v62 = vmul.f32 %v3053_v60, %v2037_v56 }
 0x60e   :  { %v1873_v4 = vsel %vm1872_vm1, %v1869_v54, %v1871_v61  ;;  %v2072_v54 = vld [vmem:[%s2456_s27] sm:$0xff] }
 0x60f   :  { %v2041_v6 = vsel %vm2040_vm2, %v2037_v56, %v2039_v62  ;;  %v1876_v7 = vsel %vm1874_vm6, %v1875_v1, %v1873_v4 }
 0x610   :  { %v2044_v8 = vsel %vm2042_vm7, %v2043_v2, %v2041_v6  ;;  %2874 = vmatmul.mubr.msk.f32.vlgmr.msra.gmra.mxu1 %vm1863_vm14, %v1876_v7 }
 0x611   :  { %v2532_v12 = vmul.f32 -1.442695, %v2044_v8  ;;  %2877 = vmatpush3.msra.mxu1 %v1767_v5  ;;  %2884 = vmatprep.mubr.msk.f32.mxu1 %vm3073_vm0, %v3071_v0 }
 0x612   :  { %2878 = vmatprep.subr.mxu1 %v3071_v0 }
 0x613   :  { %3056 = vpow2.f32 %v2532_v12  ;;  %2879 = vmatpush3.msra.mxu1 %v1766_v9 }
 0x614   :  { %2880 = vmatprep.subr.mxu1 %v3071_v0 }
 0x615   :  { %2881 = vmatpush3.msra.mxu1 %v1765_v10 }
 0x616   :  { %2882 = vmatprep.subr.mxu1 %v3071_v0 }
 0x617   :  { %2883 = vmatpush3.msra.mxu1 %v1764_v11 }
 0x618   :  { %v3055_v13 = vpop.eup %3054  ;;  %2900 = vmatprep.subr.mxu1 %v3071_v0 }
 0x619   :  { %v1746_v16 = vmul.f32 %v3055_v13, %v3684_v29  ;;  %v2070_v29 = vld [vmem:[%s3752_s19 + $0x70] sm:$0xff] }
 0x61b   :  { %v1754_v20 = vmul.f32 %v2524_v15, %v1746_v16 }
 0x61d   :  { %v3737_v14 = vadd.f32 %v2525_v18, %v1754_v20 }
 0x61f   :  { %2885 = vmatmul.mubr.msk.f32.vlgmr.msra.gmra.mxu1 %vm644_vm4, %v3737_v14 }
 0x620   :  { %v3057_v22 = vpop.eup %3056  ;;  %2904 = vmatprep.mubr.msk.f32.mxu1 %vm3073_vm0, %v3071_v0  ;;  %2901 = vmatpush3.msra.mxu1 %v2073_v44 }
 0x621   :  { %v2048_v24 = vadd.f32 1.0, %v3057_v22  ;;  %2902 = vmatprep.subr.mxu1 %v3071_v0 }
 0x622   :  { %2903 = vmatpush3.msra.mxu1 %v2072_v54 }
 0x623   :  { %3058 = vrcp.f32 %v2048_v24 }
 0x630   :  { %v3059_v57 = vpop.eup %3058 }
 0x631   :  { %v2052_v26 = vmul.f32 %v3059_v57, %v3701_v3  ;;  %v2051_v27 = vmul.f32 %v3059_v57, %v3699_v49  ;;  %v2053_v59 = vmul.f32 %v3059_v57, %v3708_v40  ;;  %v2065_v49 = vld [vmem:[%s3752_s19 + $0x48] sm:$0xff]  ;;  %v2063_v3 = vld [vmem:[%s3752_s19 + $0x38] sm:$0xff] }
 0x632   :  { %v2057_v40 = vld [vmem:[%s3752_s19 + $0x8] sm:$0xff] }
 0x633   :  { %2080 = vrot.lane.b32.xlu1 %v2052_v26, %s3102_s15  ;;  %2078 = vrot.lane.b32.xlu0 %v2051_v27, %s3102_s15 }
 0x637   :  { %2082 = vrot.lane.b32.xlu1 %v2053_v59, %s3102_s15 }
 0x6a5   :  { %v2079_v19 = vpop.permute.xlu0 %2078  ;;  %v2081_v53 = vpop.permute.xlu1 %2080 }
 0x6a6   :  { %2892 = vmatmul.mubr.msk.f32.vlgmr.msra.gmra.mxu0 %vm1863_vm14, %v2079_v19 }
 0x6a7   :  { %2894 = vmatprep.mubr.msk.f32.mxu0 %vm3073_vm0, %v3071_v0  ;;  %2908 = vmatpush3.msra.mxu0 %v2071_v35 }
 0x6a8   :  { %2909 = vmatprep.subr.mxu0 %v3071_v0 }
 0x6a9   :  { %2910 = vmatpush3.msra.mxu0 %v2070_v29  ;;  %v2083_v28 = vpop.permute.xlu1 %2082 }
 0x6aa   :  { %2895 = vmatmul.mubr.msk.f32.gmra.mxu0 %vm1863_vm14, %v2081_v53  ;;  %2911 = vmatprep.subr.mxu0 %v3071_v0 }
 0x6ab   :  { %2897 = vmatprep.mubr.msk.f32.mxu0 %vm3073_vm0, %v3071_v0  ;;  %2912 = vmatpush3.msra.mxu0 %v2069_v21 }
 0x6ac   :  { %2913 = vmatprep.subr.mxu0 %v3071_v0 }
 0x6ad   :  { %2914 = vmatpush3.msra.mxu0 %v2068_v23 }
 0x6ae   :  { %2898 = vmatmul.mubr.msk.f32.gmra.mxu0 %vm1863_vm14, %v2083_v28  ;;  %2915 = vmatprep.subr.mxu0 %v3071_v0 }
 0x6af   :  { %2916 = vmatpush3.msra.mxu0 %v2067_v25  ;;  %2939 = vmatprep.mubr.msk.f32.mxu0 %vm3073_vm0, %v3071_v0 }
 0x6b0   :  { %2917 = vmatprep.subr.mxu0 %v3071_v0 }
 0x6b1   :  { %2918 = vmatpush3.msra.mxu0 %v2066_v37 }
 0x6b2   :  { %2919 = vmatprep.subr.mxu0 %v3071_v0 }
 0x6b3   :  { %2920 = vmatpush3.msra.mxu0 %v2065_v49 }
 0x6b4   :  { %2921 = vmatprep.subr.mxu0 %v3071_v0 }
 0x6b5   :  { %2922 = vmatpush3.msra.mxu0 %v2064_v55 }
 0x6b6   :  { %2923 = vmatprep.subr.mxu0 %v3071_v0 }
 0x6b7   :  { %2924 = vmatpush3.msra.mxu0 %v2063_v3 }
 0x6b8   :  { %2925 = vmatprep.subr.mxu0 %v3071_v0 }
 0x6b9   :  { %2926 = vmatpush3.msra.mxu0 %v2062_v30 }
 0x6ba   :  { %2927 = vmatprep.subr.mxu0 %v3071_v0 }
 0x6bb   :  { %2928 = vmatpush3.msra.mxu0 %v2061_v31 }
 0x6bc   :  { %2929 = vmatprep.subr.mxu0 %v3071_v0 }
 0x6bd   :  { %2930 = vmatpush3.msra.mxu0 %v2060_v32 }
 0x6be   :  { %2931 = vmatprep.subr.mxu0 %v3071_v0 }
 0x6bf   :  { %2932 = vmatpush3.msra.mxu0 %v2059_v36 }
 0x6c0   :  { %2933 = vmatprep.subr.mxu0 %v3071_v0 }
 0x6c1   :  { %2934 = vmatpush3.msra.mxu0 %v2058_v39 }
 0x6c2   :  { %2935 = vmatprep.subr.mxu0 %v3071_v0 }
 0x6c3   :  { %2936 = vmatpush3.msra.mxu0 %v2057_v40 }
 0x6c4   :  { %2937 = vmatprep.subr.mxu0 %v3071_v0 }
 0x6c5   :  { %2938 = vmatpush3.msra.mxu0 %v2056_v41 }
 0x6d0   :  { %v1946_v42 = vpop.f32.mrf.mxu1 }
 0x6d2   :  { %v2875_v45 = vpop.f32.mrf.mxu1 }
 0x6df   :  { %v2019_v47 = vpop.f32.mrf.mxu1 }
 0x6e0   :  { %v2020_v34 = vadd.f32 %v2019_v47, %v1946_v42 }
 0x6e1   :  { %v2886_v48 = vpop.f32.mrf.mxu1 }
 0x6e2   :  { %v2029_v38 = vadd.f32 %v2531_v46, %v2020_v34 }
 0x6e4   :  { %v2030_v43 = vmax.f32 %v2029_v38, 0.0 }
 0x6e6   :  { %2940 = vmatmul.mubr.f32.vlgmr.msra.gmra.mxu0 %v2030_v43 }
 0x766   :  { %v2156_v56 = vpop.f32.mrf.mxu0 }
 0x767   :  { %2340 = vrot.lane.b32.xlu0 %v2156_v56, %s3102_s15  ;;  %v2170_v52 = vmul.f32 %v2156_v56, %v2156_v56 }
 0x768   :  { %v2893_v50 = vpop.f32.mrf.mxu0 }
 0x769   :  { %v2173_v1 = vsel %vm1863_vm14, %v2170_v52, 0.0 }
 0x76a   :  { %v2161_v51 = vpop.f32.mrf.mxu0 }
 0x76b   :  { %v2171_v58 = vmul.f32 %v2161_v51, %v2161_v51  ;;  %2342 = vrot.lane.b32.xlu1 %v2161_v51, %s3102_s15 }
 0x76c   :  { %v2896_v60 = vpop.f32.mrf.mxu0 }
 0x76d   :  { %v2174_v61 = vsel %vm1863_vm14, %v2171_v58, 0.0  ;;  %v2539_v58 = vld [vmem:[%s2460_s8] ss:$0 sm:$0xff] }
 0x76e   :  { %v2166_v62 = vpop.f32.mrf.mxu0  ;;  %v2175_v4 = vadd.f32 %v2174_v61, %v2173_v1  ;;  %v2540_v61 = vld [vmem:[%s2461_s12] ss:$0 sm:$0xff] }
 0x76f   :  { %v2172_v2 = vmul.f32 %v2166_v62, %v2166_v62  ;;  %2344 = vrot.lane.b32.xlu0 %v2166_v62, %s3102_s15 }
 0x770   :  { %v2899_v5 = vpop.f32.mrf.mxu0 }
 0x771   :  { %v2176_v6 = vsel %vm1863_vm14, %v2172_v2, 0.0 }
 0x772   :  { %v2177_v7 = vadd.f32 %v2176_v6, %v2175_v4 }
 0x774   :  { %v2178_v8 = vmax.f32 %v2177_v7, 1e-08 }
 0x776   :  { %3060 = vrsqrt.f32 %v2178_v8  ;;  %vm2181_vm0 = vcmp.eq.f32.partialorder %v2178_v8, inf  ;;  %v2184_v10 = vand.u32 2147483648, %v2178_v8  ;;  %vm2183_vm8 = vcmp.eq.f32.partialorder %v2178_v8, 0.0 }
 0x783   :  { %v3061_v9 = vpop.eup %3060 }
 0x784   :  { %v2180_v12 = vmul.f32 %v3061_v9, %v2178_v8 }
 0x786   :  { %v2182_v11 = vsel %vm2181_vm0, %v2178_v8, %v2180_v12 }
 0x787   :  { %v2185_v13 = vsel %vm2183_vm8, %v2184_v10, %v2182_v11 }
 0x788   :  { %2905 = vmatmul.mubr.msk.f32.vlgmr.msra.gmra.mxu1 %vm1863_vm14, %v2185_v13 }
 0x7a6   :  { %v2325_v15 = vpop.f32.mrf.mxu0 }
 0x7a8   :  { %v2941_v16 = vpop.f32.mrf.mxu0 }
 0x7d9   :  { %v2341_v18 = vpop.permute.xlu0 %2340 }
 0x7da   :  { %v2349_v20 = vadd.f32 %v2341_v18, %v3664_v17 }
 0x7dc   :  { %v2352_v57 = vmul.f32 %v2349_v20, %v2349_v20 }
 0x7dd   :  { %v2343_v22 = vpop.permute.xlu1 %2342 }
 0x7de   :  { %v2350_v24 = vadd.f32 %v2343_v22, %v3671_v33  ;;  %v2355_v19 = vsel %vm305_vm3, %v2352_v57, 0.0 }
 0x7e0   :  { %v2353_v26 = vmul.f32 %v2350_v24, %v2350_v24 }
 0x7e1   :  { %v2345_v27 = vpop.permute.xlu0 %2344 }
 0x7e2   :  { %v2356_v59 = vsel %vm305_vm3, %v2353_v26, 0.0  ;;  %v2351_v35 = vadd.f32 %v2345_v27, %v3678_v63  ;;  %v2537_v63 = vld [vmem:[%s2457_s1] ss:$0 sm:$0xff] }
 0x7e3   :  { %v2357_v53 = vadd.f32 %v2356_v59, %v2355_v19 }
 0x7e4   :  { %v2354_v29 = vmul.f32 %v2351_v35, %v2351_v35 }
 0x7e6   :  { %v2358_v21 = vsel %vm305_vm3, %v2354_v29, 0.0 }
 0x7e7   :  { %v2359_v23 = vadd.f32 %v2358_v21, %v2357_v53 }
 0x7e9   :  { %v2360_v25 = vmax.f32 %v2359_v23, 1e-08 }
 0x7eb   :  { %vm2361_vm9 = vcmp.gt.f32.partialorder %v2360_v25, 2e-08 }
 0x7ec   :  { %v2538_v17 = vsel %vm2361_vm9, 1.0, %v3071_v0 }
 0x7ed   :  { %v2368_v33 = vsel %vm305_vm3, %v2538_v17, 0.0  ;;  %v2364_v28 = vmul.f32 %v2538_v17, %v2360_v25 }
 0x7ee   :  { %2369 = vadd.xlane.f32.xlu0 %v2368_v33 }
 0x7ef   :  { %v2365_v37 = vsel %vm305_vm3, %v2364_v28, 0.0  ;;  %vm2422_vm3 = vcmask 326656  }
 0x7f2   :  { %2366 = vadd.xlane.f32.xlu0 %v2365_v37 }
 0x848   :  { %v2255_v49 = vpop.f32.mrf.mxu1 }
 0x849   :  { %v2326_v55 = vadd.f32 %v2325_v15, %v2255_v49 }
 0x84a   :  { %v2906_v3 = vpop.f32.mrf.mxu1 }
 0x84b   :  { %v2335_v30 = vadd.f32 %v2537_v63, %v2326_v55 }
 0x84d   :  { %v2336_v31 = vadd.f32 %v2335_v30, %v3737_v14 }
 0x84f   :  { %v2380_v0 = vsel %vm644_vm4, %v2336_v31, 0.0 }
 0x850   :  { %2381 = vadd.xlane.f32.xlu1 %v2380_v0 }
 0x877   :  { %v2370_v32 = vpop.xlane.xlu0 %2369 }
 0x878   :  { %v2371_v36 = vadd.f32 1e-08, %v2370_v32 }
 0x87a   :  { %3062 = vrcp.f32 %v2371_v36 }
 0x87b   :  { %v2367_v40 = vpop.xlane.xlu0 %2366 }
 0x887   :  { %v3063_v39 = vpop.eup %3062 }
 0x888   :  { %v2373_v41 = vmul.f32 %v3063_v39, %v2367_v40 }
 0x88a   :  { %v2374_v42 = vadd.f32 1e-08, %v2373_v41 }
 0x88c   :  { %3064 = vrsqrt.f32 %v2374_v42 }
 0x899   :  { %v3065_v45 = vpop.eup %3064 }
 0x89a   :  { %v2376_v46 = vmul.f32 %v3065_v45, %v2538_v17 }
 0x89c   :  { %v2377_v47 = vmul.f32 %v2376_v46, %v2349_v20  ;;  %v2378_v44 = vmul.f32 %v2376_v46, %v2350_v24  ;;  %v2379_v54 = vmul.f32 %v2376_v46, %v2351_v35 }
 0x89e   :  { %2410 = vrot.lane.b32.xlu0 %v2377_v47, %s3107_s2 }
 0x8d9   :  { %v2382_v34 = vpop.xlane.xlu1 %2381 }
 0x8da   :  { %v2383_v48 = vmul.f32 0.03125, %v2382_v34 }
 0x8dc   :  { %v2384_v38 = vsub.f32 %v2336_v31, %v2383_v48 }
 0x8de   :  { %v2385_v14 = vmul.f32 %v2384_v38, %v2384_v38 }
 0x8e0   :  { %v2386_v43 = vsel %vm644_vm4, %v2385_v14, 0.0 }
 0x8e1   :  { %2387 = vadd.xlane.f32.xlu1 %v2386_v43 }
 0x8f2   :  { %2414 = vrot.lane.b32.xlu1 %v2378_v44, %s3108_s3 }
 0x8f6   :  { %2418 = vrot.lane.b32.xlu1 %v2379_v54, %s3109_s4 }
 0x910   :  { %v2411_v4 = vpop.permute.xlu0 %2410 }
 0x96a   :  { %v2388_v56 = vpop.xlane.xlu1 %2387 }
 0x96b   :  { %v2389_v50 = vmul.f32 0.03125, %v2388_v56 }
 0x96d   :  { %v2390_v51 = vadd.f32 1e-05, %v2389_v50 }
 0x96e   :  { %v2415_v62 = vpop.permute.xlu1 %2414 }
 0x96f   :  { %3066 = vrsqrt.f32 %v2390_v51 }
 0x972   :  { %v2419_v7 = vpop.permute.xlu1 %2418 }
 0x97c   :  { %v3067_v52 = vpop.eup %3066 }
 0x97d   :  { %v2392_v60 = vmul.f32 %v3067_v52, %v2384_v38 }
 0x97f   :  { %v2400_v1 = vmul.f32 %v2539_v58, %v2392_v60 }
 0x981   :  { %v2408_v2 = vadd.f32 %v2540_v61, %v2400_v1 }
 0x983   :  { %v2421_v5 = vsel %vm644_vm4, %v2408_v2, %v2411_v4 }
 0x984   :  { %v2423_v6 = vsel %vm2422_vm3, %v2421_v5, %v2415_v62 }
 0x985   :  { %v2424_v8 = vsel %vm545_vm5, %v2423_v6, %v2419_v7 }
 0x986   :  { %v2426_v9 = vsel %vm2425_vm10, %v2424_v8, 0.0 }
 0x987   :  { %2427 = vst [vmem:[%s2462_s16] sm:$0xff] %v2426_v9 }

</bundles_post_ra>
